<compile_context>
chip_gen: v5e
topology: v5e:2x2
jax: 0.10.0
libtpu: 0.0.40
codegen_flags: <defaults>
</compile_context>

<pallas_src>
import functools

import jax
import jax.numpy as jnp
from jax.experimental import pallas as pl
from jax.experimental.pallas import tpu as pltpu


def _mhsa_ln_kernel(x_ref, w_in_ref, b_in_ref, wo_ref, bo_ref, gamma_ref, beta_ref,
                    o_ref, *, n_heads):
    """block_b batch elements per grid step, native (D, L) channel-first layout."""
    bt, D, L = x_ref.shape
    H = n_heads
    hd = D // H

    w_in_t = w_in_ref[...]                       # (D, 3D) bf16, scale folded into Q cols
    b_in = b_in_ref[...]                         # (1, 3D) f32
    wo = wo_ref[...]                             # (D, D)  bf16, torch orientation

    # ---- QKV projection, (C, L) -> (L, C) transpose folded into the matmul -------
    # qkv_b[l, j] = sum_d x_b[d, l] * W_in^T[d, j]   (transposed-LHS dot_general)
    tn = (((0,), (0,)), ((), ()))
    qkv = [
        jax.lax.dot_general(x_ref[b].astype(jnp.bfloat16), w_in_t, tn,
                            preferred_element_type=jnp.float32) + b_in
        for b in range(bt)
    ]                                            # bt x (L, 3D) f32

    # ---- head-batched attention over one (bt*H)-deep leading batch dim -----------
    def gather_heads(off):
        return jnp.stack(
            [qkv[b][:, off + h * hd: off + (h + 1) * hd]
             for b in range(bt) for h in range(H)],
            axis=0).astype(jnp.bfloat16)         # (bt*H, L, hd)

    q, k, v = gather_heads(0), gather_heads(D), gather_heads(2 * D)

    # 1/sqrt(hd) is pre-folded into Wq / bq, so no score scaling here.
    s = jnp.einsum('gqd,gkd->gqk', q, k,
                   preferred_element_type=jnp.float32)                 # (bt*H, L, L)
    s = s - jnp.max(s, axis=-1, keepdims=True)
    p = jnp.exp(s)                                                     # EUP
    p = p * pl.reciprocal(jnp.sum(p, axis=-1, keepdims=True), approx=True)
    ctx = jnp.einsum('gqk,gkd->gqd', p.astype(jnp.bfloat16), v,
                     preferred_element_type=jnp.float32)               # (bt*H, L, hd)

    # ---- merge heads -> (bt*L, D) and run ONE K=D output projection --------------
    ctx_tokens = jnp.concatenate(
        [jnp.concatenate([ctx[b * H + h] for h in range(H)], axis=-1)  # (L, D)
         for b in range(bt)], axis=0).astype(jnp.bfloat16)             # (bt*L, D)

    # out^T = Wo @ ctx^T  (transposed-RHS dot_general) -> channels-first (D, bt*L),
    # so the (L, C) -> (C, L) output transpose is folded into the matmul as well.
    out_t = jax.lax.dot_general(wo, ctx_tokens, (((1,), (1,)), ((), ())),
                                preferred_element_type=jnp.float32)    # (D, bt*L)
    out_t = out_t + bo_ref[...]

    # ---- LayerNorm over d_model (channel axis = 0 here; torch eps = 1e-5), f32 ---
    mean = jnp.mean(out_t, axis=0, keepdims=True)
    var = jnp.mean(jnp.square(out_t - mean), axis=0, keepdims=True)
    y_t = (out_t - mean) * jax.lax.rsqrt(var + 1e-5) * gamma_ref[...] + beta_ref[...]

    for b in range(bt):
        o_ref[b] = y_t[:, b * L:(b + 1) * L].astype(o_ref.dtype)       # (D, L)


def _vmem_limit_bytes():
    """Derive the scoped-VMEM limit from the actual chip (v7x: 64 MiB physical)."""
    cap = 128 * 1024 * 1024
    try:
        info = pltpu.get_tpu_info()
        cap = int(getattr(info, "vmem_capacity_bytes", cap))
    except Exception:
        pass
    return max(32 * 1024 * 1024, min(96 * 1024 * 1024, (cap * 3) // 4))


def _pick_block_b(batch, seq_len, d_model, vmem_limit_bytes, target_rows=256):
    """Batch elements per grid step.  No >=2-grid-step constraint (single-TC chips);
    pick the smallest divisor reaching target_rows tokens/step (amortizes the
    ~0.35us/step overhead), else the largest that keeps the double-buffered f32
    in/out activation blocks within ~1/4 of the VMEM budget."""
    block_bytes = 4 * seq_len * d_model * 4          # 2x in + 2x out buffers, f32
    max_b = max(1, vmem_limit_bytes // (4 * block_bytes))
    cands = [d for d in range(1, batch + 1) if batch % d == 0 and d <= max_b] or [1]
    for d in cands:                                   # ascending
        if d * seq_len >= target_rows:
            return d
    return cands[-1]


def prepare_mhsa_params(params, n_heads):
    """One-time weight prep (hoisted out of the forward call): fuse Q/K/V, fold the
    1/sqrt(head_dim) scale into Wq/bq, pre-transpose W_in, cast matmul weights bf16."""
    wq, wk, wv, bq, bk, bv, wo, bo, gamma, beta = params
    D = wq.shape[0]
    hd = D // n_heads
    scale = 1.0 / float(hd) ** 0.5

    w_in = jnp.concatenate([wq * scale, wk, wv], axis=0)           # (3D, D)
    w_in_t = w_in.T.astype(jnp.bfloat16)                           # (D, 3D) bf16
    b_in = jnp.concatenate([bq * scale, bk, bv]).reshape(1, 3 * D).astype(jnp.float32)
    wo_bf = wo.astype(jnp.bfloat16)                                # (D, D) bf16
    bo_c = bo.reshape(D, 1).astype(jnp.float32)
    gamma_c = gamma.reshape(D, 1).astype(jnp.float32)
    beta_c = beta.reshape(D, 1).astype(jnp.float32)
    return (w_in_t, b_in, wo_bf, bo_c, gamma_c, beta_c)


def multi_head_self_attn_1d(x, prepared, n_heads, block_b=None):
    """x: (B, C, L) float32 with C == d_model.  Returns (B, C, L) — native layout
    end to end, no wrapper transposes."""
    B, D, L = x.shape
    assert D % n_heads == 0, "d_model must be divisible by n_heads"
    w_in_t, b_in, wo_bf, bo_c, gamma_c, beta_c = prepared

    vmem_limit = _vmem_limit_bytes()
    bt = _pick_block_b(B, L, D, vmem_limit) if block_b is None else block_b
    assert B % bt == 0, "block_b must divide the batch"

    def const_spec(shape):
        return pl.BlockSpec(shape, lambda b: tuple(0 for _ in shape))

    out = pl.pallas_call(
        functools.partial(_mhsa_ln_kernel, n_heads=n_heads),
        out_shape=jax.ShapeDtypeStruct((B, D, L), x.dtype),
        grid_spec=pltpu.PrefetchScalarGridSpec(
            num_scalar_prefetch=0,
            grid=(B // bt,),
            in_specs=[
                pl.BlockSpec((bt, D, L), lambda b: (b, 0, 0)),   # x block (native)
                const_spec((D, 3 * D)),                          # fused W_in^T (bf16)
                const_spec((1, 3 * D)),                          # fused in-proj bias
                const_spec((D, D)),                              # Wo (bf16)
                const_spec((D, 1)),                              # bo (column)
                const_spec((D, 1)),                              # LN gamma (column)
                const_spec((D, 1)),                              # LN beta  (column)
            ],
            out_specs=pl.BlockSpec((bt, D, L), lambda b: (b, 0, 0)),
        ),
        compiler_params=pltpu.CompilerParams(
            dimension_semantics=("parallel",),
            vmem_limit_bytes=vmem_limit,
        ),
    )(x, w_in_t, b_in, wo_bf, bo_c, gamma_c, beta_c)

    return out                                                   # already (B, C, L)


def _reference(x, params, n_heads):
    """Plain-JAX reference reproducing torch MultiheadAttention + LayerNorm."""
    wq, wk, wv, bq, bk, bv, wo, bo, gamma, beta = params
    B, C, L = x.shape
    D = C
    hd = D // n_heads
    xt = jnp.transpose(x, (0, 2, 1))                             # (B, L, D)
    q = xt @ wq.T + bq
    k = xt @ wk.T + bk
    v = xt @ wv.T + bv

    def split(a):  # (B, L, D) -> (B, H, L, hd)
        return a.reshape(B, L, n_heads, hd).transpose(0, 2, 1, 3)

    qh, kh, vh = split(q), split(k), split(v)
    s = jnp.einsum('bhqd,bhkd->bhqk', qh, kh) / jnp.sqrt(jnp.float32(hd))
    p = jax.nn.softmax(s, axis=-1)
    ctx = jnp.einsum('bhqk,bhkd->bhqd', p, vh).transpose(0, 2, 1, 3).reshape(B, L, D)
    out = ctx @ wo.T + bo
    mean = out.mean(axis=-1, keepdims=True)
    var = ((out - mean) ** 2).mean(axis=-1, keepdims=True)
    y = (out - mean) / jnp.sqrt(var + 1e-5) * gamma + beta
    return jnp.transpose(y, (0, 2, 1))


if __name__ == "__main__":
    d_model, n_heads = 64, 4
    B, L = 2, 16

    key = jax.random.PRNGKey(0)
    keys = jax.random.split(key, 11)
    init = lambda k, shape: (0.1 * jax.random.normal(k, shape)).astype(jnp.float32)

    # nn.MultiheadAttention: in_proj_weight (3D, D) split into Wq/Wk/Wv; out_proj (D, D).
    params = (
        init(keys[0], (d_model, d_model)),   # Wq
        init(keys[1], (d_model, d_model)),   # Wk
        init(keys[2], (d_model, d_model)),   # Wv
        init(keys[3], (d_model,)),           # bq
        init(keys[4], (d_model,)),           # bk
        init(keys[5], (d_model,)),           # bv
        init(keys[6], (d_model, d_model)),   # Wo (out_proj.weight)
        init(keys[7], (d_model,)),           # bo (out_proj.bias)
        1.0 + init(keys[8], (d_model,)),     # LayerNorm gamma
        init(keys[9], (d_model,)),           # LayerNorm beta
    )

    x = jax.random.normal(keys[10], (B, d_model, L), dtype=jnp.float32)

    prepared = prepare_mhsa_params(params, n_heads)   # one-time weight prep (hoisted)

    y = jax.block_until_ready(multi_head_self_attn_1d(x, prepared, n_heads))
    y_ref = jax.block_until_ready(_reference(x, params, n_heads))

    assert y.shape == (B, d_model, L)
    # bf16 MXU inputs + approx softmax reciprocal vs default-precision f32 reference.
    assert jnp.allclose(y, y_ref, atol=2e-2, rtol=2e-2), "kernel/reference mismatch"

    print("KERNEL_OK")
</pallas_src>

<mosaic_0001>
module attributes {stable_mosaic.version = 11 : i64} {
  func.func @_mhsa_ln_kernel(%arg0: i32, %arg1: memref<2x64x16xf32, #tpu.memory_space<vmem>>, %arg2: memref<64x192xbf16, #tpu.memory_space<vmem>>, %arg3: memref<1x192xf32, #tpu.memory_space<vmem>>, %arg4: memref<64x64xbf16, #tpu.memory_space<vmem>>, %arg5: memref<64x1xf32, #tpu.memory_space<vmem>>, %arg6: memref<64x1xf32, #tpu.memory_space<vmem>>, %arg7: memref<64x1xf32, #tpu.memory_space<vmem>>, %arg8: memref<2x64x16xf32, #tpu.memory_space<vmem>>) attributes {dimension_semantics = [#tpu.dimension_semantics<parallel>], iteration_bounds = array<i64: 1>, scalar_prefetch = 0 : i64, scratch_operands = 0 : i64, tpu.core_type = #tpu.core_type<tc>, window_params = [{transform_indices = @transform_0, window_bounds = array<i64: 2, 64, 16>}, {pipeline_mode = #tpu.pipeline_mode<synchronous>, transform_indices = @transform_1, window_bounds = array<i64: 64, 192>}, {pipeline_mode = #tpu.pipeline_mode<synchronous>, transform_indices = @transform_2, window_bounds = array<i64: 1, 192>}, {pipeline_mode = #tpu.pipeline_mode<synchronous>, transform_indices = @transform_3, window_bounds = array<i64: 64, 64>}, {pipeline_mode = #tpu.pipeline_mode<synchronous>, transform_indices = @transform_4, window_bounds = array<i64: 64, 1>}, {pipeline_mode = #tpu.pipeline_mode<synchronous>, transform_indices = @transform_5, window_bounds = array<i64: 64, 1>}, {pipeline_mode = #tpu.pipeline_mode<synchronous>, transform_indices = @transform_6, window_bounds = array<i64: 64, 1>}, {transform_indices = @transform_7, window_bounds = array<i64: 2, 64, 16>}]} {
    %c0 = arith.constant 0 : index
    %c0_0 = arith.constant 0 : index
    %0 = vector.load %arg2[%c0, %c0_0] : memref<64x192xbf16, #tpu.memory_space<vmem>>, vector<64x192xbf16>
    %c0_1 = arith.constant 0 : index
    %c0_2 = arith.constant 0 : index
    %1 = vector.load %arg3[%c0_1, %c0_2] : memref<1x192xf32, #tpu.memory_space<vmem>>, vector<1x192xf32>
    %c0_3 = arith.constant 0 : index
    %c0_4 = arith.constant 0 : index
    %2 = vector.load %arg4[%c0_3, %c0_4] : memref<64x64xbf16, #tpu.memory_space<vmem>>, vector<64x64xbf16>
    %c0_5 = arith.constant 0 : index
    %c0_6 = arith.constant 0 : index
    %c0_7 = arith.constant 0 : index
    %3 = vector.load %arg1[%c0_5, %c0_6, %c0_7] : memref<2x64x16xf32, #tpu.memory_space<vmem>>, vector<1x64x16xf32>
    %4 = vector.shape_cast %3 : vector<1x64x16xf32> to vector<64x16xf32>
    %5 = arith.truncf %4 : vector<64x16xf32> to vector<64x16xbf16>
    %cst = arith.constant dense<0.000000e+00> : vector<16x192xf32>
    %6 = tpu.matmul %5, %0, %cst {dimension_numbers = #tpu.dot_dimension_numbers<[0], [0], [1], [1], [0, 1, 1, 1], [], []>} : vector<64x16xbf16>, vector<64x192xbf16>, vector<16x192xf32> -> vector<16x192xf32>
    %7 = vector.broadcast %1 : vector<1x192xf32> to vector<16x192xf32>
    %8 = arith.addf %6, %7 : vector<16x192xf32>
    %c1 = arith.constant 1 : index
    %c0_8 = arith.constant 0 : index
    %c0_9 = arith.constant 0 : index
    %9 = vector.load %arg1[%c1, %c0_8, %c0_9] : memref<2x64x16xf32, #tpu.memory_space<vmem>>, vector<1x64x16xf32>
    %10 = vector.shape_cast %9 : vector<1x64x16xf32> to vector<64x16xf32>
    %11 = arith.truncf %10 : vector<64x16xf32> to vector<64x16xbf16>
    %cst_10 = arith.constant dense<0.000000e+00> : vector<16x192xf32>
    %12 = tpu.matmul %11, %0, %cst_10 {dimension_numbers = #tpu.dot_dimension_numbers<[0], [0], [1], [1], [0, 1, 1, 1], [], []>} : vector<64x16xbf16>, vector<64x192xbf16>, vector<16x192xf32> -> vector<16x192xf32>
    %13 = vector.broadcast %1 : vector<1x192xf32> to vector<16x192xf32>
    %14 = arith.addf %12, %13 : vector<16x192xf32>
    %15 = vector.extract_strided_slice %8 {offsets = [0, 0], sizes = [16, 16], strides = [1, 1]} : vector<16x192xf32> to vector<16x16xf32>
    %16 = vector.extract_strided_slice %8 {offsets = [0, 16], sizes = [16, 16], strides = [1, 1]} : vector<16x192xf32> to vector<16x16xf32>
    %17 = vector.extract_strided_slice %8 {offsets = [0, 32], sizes = [16, 16], strides = [1, 1]} : vector<16x192xf32> to vector<16x16xf32>
    %18 = vector.extract_strided_slice %8 {offsets = [0, 48], sizes = [16, 16], strides = [1, 1]} : vector<16x192xf32> to vector<16x16xf32>
    %19 = vector.extract_strided_slice %14 {offsets = [0, 0], sizes = [16, 16], strides = [1, 1]} : vector<16x192xf32> to vector<16x16xf32>
    %20 = vector.extract_strided_slice %14 {offsets = [0, 16], sizes = [16, 16], strides = [1, 1]} : vector<16x192xf32> to vector<16x16xf32>
    %21 = vector.extract_strided_slice %14 {offsets = [0, 32], sizes = [16, 16], strides = [1, 1]} : vector<16x192xf32> to vector<16x16xf32>
    %22 = vector.extract_strided_slice %14 {offsets = [0, 48], sizes = [16, 16], strides = [1, 1]} : vector<16x192xf32> to vector<16x16xf32>
    %23 = vector.shape_cast %15 : vector<16x16xf32> to vector<1x16x16xf32>
    %24 = vector.shape_cast %16 : vector<16x16xf32> to vector<1x16x16xf32>
    %25 = vector.shape_cast %17 : vector<16x16xf32> to vector<1x16x16xf32>
    %26 = vector.shape_cast %18 : vector<16x16xf32> to vector<1x16x16xf32>
    %27 = vector.shape_cast %19 : vector<16x16xf32> to vector<1x16x16xf32>
    %28 = vector.shape_cast %20 : vector<16x16xf32> to vector<1x16x16xf32>
    %29 = vector.shape_cast %21 : vector<16x16xf32> to vector<1x16x16xf32>
    %30 = vector.shape_cast %22 : vector<16x16xf32> to vector<1x16x16xf32>
    %31 = tpu.concatenate %23, %24, %25, %26, %27, %28, %29, %30 in 0 : vector<1x16x16xf32>, vector<1x16x16xf32>, vector<1x16x16xf32>, vector<1x16x16xf32>, vector<1x16x16xf32>, vector<1x16x16xf32>, vector<1x16x16xf32>, vector<1x16x16xf32> -> vector<8x16x16xf32>
    %32 = arith.truncf %31 : vector<8x16x16xf32> to vector<8x16x16xbf16>
    %33 = vector.extract_strided_slice %8 {offsets = [0, 64], sizes = [16, 16], strides = [1, 1]} : vector<16x192xf32> to vector<16x16xf32>
    %34 = vector.extract_strided_slice %8 {offsets = [0, 80], sizes = [16, 16], strides = [1, 1]} : vector<16x192xf32> to vector<16x16xf32>
    %35 = vector.extract_strided_slice %8 {offsets = [0, 96], sizes = [16, 16], strides = [1, 1]} : vector<16x192xf32> to vector<16x16xf32>
    %36 = vector.extract_strided_slice %8 {offsets = [0, 112], sizes = [16, 16], strides = [1, 1]} : vector<16x192xf32> to vector<16x16xf32>
    %37 = vector.extract_strided_slice %14 {offsets = [0, 64], sizes = [16, 16], strides = [1, 1]} : vector<16x192xf32> to vector<16x16xf32>
    %38 = vector.extract_strided_slice %14 {offsets = [0, 80], sizes = [16, 16], strides = [1, 1]} : vector<16x192xf32> to vector<16x16xf32>
    %39 = vector.extract_strided_slice %14 {offsets = [0, 96], sizes = [16, 16], strides = [1, 1]} : vector<16x192xf32> to vector<16x16xf32>
    %40 = vector.extract_strided_slice %14 {offsets = [0, 112], sizes = [16, 16], strides = [1, 1]} : vector<16x192xf32> to vector<16x16xf32>
    %41 = vector.shape_cast %33 : vector<16x16xf32> to vector<1x16x16xf32>
    %42 = vector.shape_cast %34 : vector<16x16xf32> to vector<1x16x16xf32>
    %43 = vector.shape_cast %35 : vector<16x16xf32> to vector<1x16x16xf32>
    %44 = vector.shape_cast %36 : vector<16x16xf32> to vector<1x16x16xf32>
    %45 = vector.shape_cast %37 : vector<16x16xf32> to vector<1x16x16xf32>
    %46 = vector.shape_cast %38 : vector<16x16xf32> to vector<1x16x16xf32>
    %47 = vector.shape_cast %39 : vector<16x16xf32> to vector<1x16x16xf32>
    %48 = vector.shape_cast %40 : vector<16x16xf32> to vector<1x16x16xf32>
    %49 = tpu.concatenate %41, %42, %43, %44, %45, %46, %47, %48 in 0 : vector<1x16x16xf32>, vector<1x16x16xf32>, vector<1x16x16xf32>, vector<1x16x16xf32>, vector<1x16x16xf32>, vector<1x16x16xf32>, vector<1x16x16xf32>, vector<1x16x16xf32> -> vector<8x16x16xf32>
    %50 = arith.truncf %49 : vector<8x16x16xf32> to vector<8x16x16xbf16>
    %51 = vector.extract_strided_slice %8 {offsets = [0, 128], sizes = [16, 16], strides = [1, 1]} : vector<16x192xf32> to vector<16x16xf32>
    %52 = vector.extract_strided_slice %8 {offsets = [0, 144], sizes = [16, 16], strides = [1, 1]} : vector<16x192xf32> to vector<16x16xf32>
    %53 = vector.extract_strided_slice %8 {offsets = [0, 160], sizes = [16, 16], strides = [1, 1]} : vector<16x192xf32> to vector<16x16xf32>
    %54 = vector.extract_strided_slice %8 {offsets = [0, 176], sizes = [16, 16], strides = [1, 1]} : vector<16x192xf32> to vector<16x16xf32>
    %55 = vector.extract_strided_slice %14 {offsets = [0, 128], sizes = [16, 16], strides = [1, 1]} : vector<16x192xf32> to vector<16x16xf32>
    %56 = vector.extract_strided_slice %14 {offsets = [0, 144], sizes = [16, 16], strides = [1, 1]} : vector<16x192xf32> to vector<16x16xf32>
    %57 = vector.extract_strided_slice %14 {offsets = [0, 160], sizes = [16, 16], strides = [1, 1]} : vector<16x192xf32> to vector<16x16xf32>
    %58 = vector.extract_strided_slice %14 {offsets = [0, 176], sizes = [16, 16], strides = [1, 1]} : vector<16x192xf32> to vector<16x16xf32>
    %59 = vector.shape_cast %51 : vector<16x16xf32> to vector<1x16x16xf32>
    %60 = vector.shape_cast %52 : vector<16x16xf32> to vector<1x16x16xf32>
    %61 = vector.shape_cast %53 : vector<16x16xf32> to vector<1x16x16xf32>
    %62 = vector.shape_cast %54 : vector<16x16xf32> to vector<1x16x16xf32>
    %63 = vector.shape_cast %55 : vector<16x16xf32> to vector<1x16x16xf32>
    %64 = vector.shape_cast %56 : vector<16x16xf32> to vector<1x16x16xf32>
    %65 = vector.shape_cast %57 : vector<16x16xf32> to vector<1x16x16xf32>
    %66 = vector.shape_cast %58 : vector<16x16xf32> to vector<1x16x16xf32>
    %67 = tpu.concatenate %59, %60, %61, %62, %63, %64, %65, %66 in 0 : vector<1x16x16xf32>, vector<1x16x16xf32>, vector<1x16x16xf32>, vector<1x16x16xf32>, vector<1x16x16xf32>, vector<1x16x16xf32>, vector<1x16x16xf32>, vector<1x16x16xf32> -> vector<8x16x16xf32>
    %68 = arith.truncf %67 : vector<8x16x16xf32> to vector<8x16x16xbf16>
    "tpu.trace_start"() <{level = 10 : i32, message = "gqd,gkd->gqk"}> : () -> ()
    %cst_11 = arith.constant dense<0.000000e+00> : vector<8x16x16xf32>
    %69 = tpu.matmul %32, %50, %cst_11 {dimension_numbers = #tpu.dot_dimension_numbers<[2], [2], [1], [1], [0, 0, 0, 1, 1, 1], [0], [0]>} : vector<8x16x16xbf16>, vector<8x16x16xbf16>, vector<8x16x16xf32> -> vector<8x16x16xf32>
    "tpu.trace_stop"() : () -> ()
    %cst_12 = arith.constant dense<0xFF800000> : vector<8x16xf32>
    %70 = vector.multi_reduction <maximumf>, %69, %cst_12 [2] : vector<8x16x16xf32> to vector<8x16xf32>
    %71 = vector.shape_cast %70 : vector<8x16xf32> to vector<8x16x1xf32>
    %72 = vector.broadcast %71 : vector<8x16x1xf32> to vector<8x16x16xf32>
    %73 = arith.subf %69, %72 : vector<8x16x16xf32>
    %74 = math.exp %73 : vector<8x16x16xf32>
    %cst_13 = arith.constant dense<0.000000e+00> : vector<8x16xf32>
    %75 = vector.multi_reduction <add>, %74, %cst_13 [2] : vector<8x16x16xf32> to vector<8x16xf32>
    %76 = vector.shape_cast %75 : vector<8x16xf32> to vector<8x16x1xf32>
    %77 = tpu.reciprocal %76 {approx = true} : vector<8x16x1xf32> -> vector<8x16x1xf32>
    %78 = vector.broadcast %77 : vector<8x16x1xf32> to vector<8x16x16xf32>
    %79 = arith.mulf %74, %78 : vector<8x16x16xf32>
    %80 = arith.truncf %79 : vector<8x16x16xf32> to vector<8x16x16xbf16>
    "tpu.trace_start"() <{level = 10 : i32, message = "gqk,gkd->gqd"}> : () -> ()
    %cst_14 = arith.constant dense<0.000000e+00> : vector<8x16x16xf32>
    %81 = tpu.matmul %80, %68, %cst_14 {dimension_numbers = #tpu.dot_dimension_numbers<[2], [1], [1], [2], [0, 0, 0, 1, 1, 2], [0], [0]>} : vector<8x16x16xbf16>, vector<8x16x16xbf16>, vector<8x16x16xf32> -> vector<8x16x16xf32>
    "tpu.trace_stop"() : () -> ()
    %82 = vector.extract_strided_slice %81 {offsets = [0, 0, 0], sizes = [1, 16, 16], strides = [1, 1, 1]} : vector<8x16x16xf32> to vector<1x16x16xf32>
    %83 = vector.shape_cast %82 : vector<1x16x16xf32> to vector<16x16xf32>
    %84 = vector.extract_strided_slice %81 {offsets = [1, 0, 0], sizes = [1, 16, 16], strides = [1, 1, 1]} : vector<8x16x16xf32> to vector<1x16x16xf32>
    %85 = vector.shape_cast %84 : vector<1x16x16xf32> to vector<16x16xf32>
    %86 = vector.extract_strided_slice %81 {offsets = [2, 0, 0], sizes = [1, 16, 16], strides = [1, 1, 1]} : vector<8x16x16xf32> to vector<1x16x16xf32>
    %87 = vector.shape_cast %86 : vector<1x16x16xf32> to vector<16x16xf32>
    %88 = vector.extract_strided_slice %81 {offsets = [3, 0, 0], sizes = [1, 16, 16], strides = [1, 1, 1]} : vector<8x16x16xf32> to vector<1x16x16xf32>
    %89 = vector.shape_cast %88 : vector<1x16x16xf32> to vector<16x16xf32>
    %90 = tpu.concatenate %83, %85, %87, %89 in 1 : vector<16x16xf32>, vector<16x16xf32>, vector<16x16xf32>, vector<16x16xf32> -> vector<16x64xf32>
    %91 = vector.extract_strided_slice %81 {offsets = [4, 0, 0], sizes = [1, 16, 16], strides = [1, 1, 1]} : vector<8x16x16xf32> to vector<1x16x16xf32>
    %92 = vector.shape_cast %91 : vector<1x16x16xf32> to vector<16x16xf32>
    %93 = vector.extract_strided_slice %81 {offsets = [5, 0, 0], sizes = [1, 16, 16], strides = [1, 1, 1]} : vector<8x16x16xf32> to vector<1x16x16xf32>
    %94 = vector.shape_cast %93 : vector<1x16x16xf32> to vector<16x16xf32>
    %95 = vector.extract_strided_slice %81 {offsets = [6, 0, 0], sizes = [1, 16, 16], strides = [1, 1, 1]} : vector<8x16x16xf32> to vector<1x16x16xf32>
    %96 = vector.shape_cast %95 : vector<1x16x16xf32> to vector<16x16xf32>
    %97 = vector.extract_strided_slice %81 {offsets = [7, 0, 0], sizes = [1, 16, 16], strides = [1, 1, 1]} : vector<8x16x16xf32> to vector<1x16x16xf32>
    %98 = vector.shape_cast %97 : vector<1x16x16xf32> to vector<16x16xf32>
    %99 = tpu.concatenate %92, %94, %96, %98 in 1 : vector<16x16xf32>, vector<16x16xf32>, vector<16x16xf32>, vector<16x16xf32> -> vector<16x64xf32>
    %100 = tpu.concatenate %90, %99 in 0 : vector<16x64xf32>, vector<16x64xf32> -> vector<32x64xf32>
    %101 = arith.truncf %100 : vector<32x64xf32> to vector<32x64xbf16>
    %cst_15 = arith.constant dense<0.000000e+00> : vector<64x32xf32>
    %102 = tpu.matmul %2, %101, %cst_15 {dimension_numbers = #tpu.dot_dimension_numbers<[1], [1], [0], [0], [0, 0, 1, 0], [], []>} : vector<64x64xbf16>, vector<32x64xbf16>, vector<64x32xf32> -> vector<64x32xf32>
    %c0_16 = arith.constant 0 : index
    %c0_17 = arith.constant 0 : index
    %103 = vector.load %arg5[%c0_16, %c0_17] : memref<64x1xf32, #tpu.memory_space<vmem>>, vector<64x1xf32>
    %104 = vector.broadcast %103 : vector<64x1xf32> to vector<64x32xf32>
    %105 = arith.addf %102, %104 : vector<64x32xf32>
    %cst_18 = arith.constant dense<0.000000e+00> : vector<32xf32>
    %106 = vector.multi_reduction <add>, %105, %cst_18 [0] : vector<64x32xf32> to vector<32xf32>
    %107 = vector.shape_cast %106 : vector<32xf32> to vector<1x32xf32>
    %cst_19 = arith.constant 6.400000e+01 : f32
    %108 = vector.broadcast %cst_19 : f32 to vector<1x32xf32>
    %109 = arith.divf %107, %108 : vector<1x32xf32>
    %110 = vector.broadcast %109 : vector<1x32xf32> to vector<64x32xf32>
    %111 = arith.subf %105, %110 : vector<64x32xf32>
    %112 = arith.mulf %111, %111 : vector<64x32xf32>
    %cst_20 = arith.constant dense<0.000000e+00> : vector<32xf32>
    %113 = vector.multi_reduction <add>, %112, %cst_20 [0] : vector<64x32xf32> to vector<32xf32>
    %114 = vector.shape_cast %113 : vector<32xf32> to vector<1x32xf32>
    %cst_21 = arith.constant 6.400000e+01 : f32
    %115 = vector.broadcast %cst_21 : f32 to vector<1x32xf32>
    %116 = arith.divf %114, %115 : vector<1x32xf32>
    %117 = vector.broadcast %109 : vector<1x32xf32> to vector<64x32xf32>
    %118 = arith.subf %105, %117 : vector<64x32xf32>
    %cst_22 = arith.constant 9.99999974E-6 : f32
    %119 = vector.broadcast %cst_22 : f32 to vector<1x32xf32>
    %120 = arith.addf %116, %119 : vector<1x32xf32>
    %121 = math.rsqrt %120 : vector<1x32xf32>
    %122 = vector.broadcast %121 : vector<1x32xf32> to vector<64x32xf32>
    %123 = arith.mulf %118, %122 : vector<64x32xf32>
    %c0_23 = arith.constant 0 : index
    %c0_24 = arith.constant 0 : index
    %124 = vector.load %arg6[%c0_23, %c0_24] : memref<64x1xf32, #tpu.memory_space<vmem>>, vector<64x1xf32>
    %125 = vector.broadcast %124 : vector<64x1xf32> to vector<64x32xf32>
    %126 = arith.mulf %123, %125 : vector<64x32xf32>
    %c0_25 = arith.constant 0 : index
    %c0_26 = arith.constant 0 : index
    %127 = vector.load %arg7[%c0_25, %c0_26] : memref<64x1xf32, #tpu.memory_space<vmem>>, vector<64x1xf32>
    %128 = vector.broadcast %127 : vector<64x1xf32> to vector<64x32xf32>
    %129 = arith.addf %126, %128 : vector<64x32xf32>
    %130 = vector.extract_strided_slice %129 {offsets = [0, 0], sizes = [64, 16], strides = [1, 1]} : vector<64x32xf32> to vector<64x16xf32>
    %c0_27 = arith.constant 0 : index
    %c0_28 = arith.constant 0 : index
    %c0_29 = arith.constant 0 : index
    %131 = vector.load %arg8[%c0_27, %c0_28, %c0_29] : memref<2x64x16xf32, #tpu.memory_space<vmem>>, vector<1x64x16xf32>
    %132 = vector.shape_cast %131 : vector<1x64x16xf32> to vector<64x16xf32>
    %133 = vector.shape_cast %130 : vector<64x16xf32> to vector<1x64x16xf32>
    tpu.vector_store %arg8[%c0_27, %c0_28, %c0_29], %133 {strides = array<i32>} : memref<2x64x16xf32, #tpu.memory_space<vmem>>, vector<1x64x16xf32>,
    %134 = vector.extract_strided_slice %129 {offsets = [0, 16], sizes = [64, 16], strides = [1, 1]} : vector<64x32xf32> to vector<64x16xf32>
    %c1_30 = arith.constant 1 : index
    %c0_31 = arith.constant 0 : index
    %c0_32 = arith.constant 0 : index
    %135 = vector.load %arg8[%c1_30, %c0_31, %c0_32] : memref<2x64x16xf32, #tpu.memory_space<vmem>>, vector<1x64x16xf32>
    %136 = vector.shape_cast %135 : vector<1x64x16xf32> to vector<64x16xf32>
    %137 = vector.shape_cast %134 : vector<64x16xf32> to vector<1x64x16xf32>
    tpu.vector_store %arg8[%c1_30, %c0_31, %c0_32], %137 {strides = array<i32>} : memref<2x64x16xf32, #tpu.memory_space<vmem>>, vector<1x64x16xf32>,
    return
  }
  func.func @transform_0(%arg0: i32) -> (i32, i32, i32) {
    %c0_i32 = arith.constant 0 : i32
    %c0_i32_0 = arith.constant 0 : i32
    %c0_i32_1 = arith.constant 0 : i32
    return %arg0, %c0_i32, %c0_i32_0 : i32, i32, i32
  }
  func.func @transform_1(%arg0: i32) -> (i32, i32) {
    %c0_i32 = arith.constant 0 : i32
    %c0_i32_0 = arith.constant 0 : i32
    %c0_i32_1 = arith.constant 0 : i32
    return %c0_i32, %c0_i32_0 : i32, i32
  }
  func.func @transform_2(%arg0: i32) -> (i32, i32) {
    %c0_i32 = arith.constant 0 : i32
    %c0_i32_0 = arith.constant 0 : i32
    %c0_i32_1 = arith.constant 0 : i32
    return %c0_i32, %c0_i32_0 : i32, i32
  }
  func.func @transform_3(%arg0: i32) -> (i32, i32) {
    %c0_i32 = arith.constant 0 : i32
    %c0_i32_0 = arith.constant 0 : i32
    %c0_i32_1 = arith.constant 0 : i32
    return %c0_i32, %c0_i32_0 : i32, i32
  }
  func.func @transform_4(%arg0: i32) -> (i32, i32) {
    %c0_i32 = arith.constant 0 : i32
    %c0_i32_0 = arith.constant 0 : i32
    %c0_i32_1 = arith.constant 0 : i32
    return %c0_i32, %c0_i32_0 : i32, i32
  }
  func.func @transform_5(%arg0: i32) -> (i32, i32) {
    %c0_i32 = arith.constant 0 : i32
    %c0_i32_0 = arith.constant 0 : i32
    %c0_i32_1 = arith.constant 0 : i32
    return %c0_i32, %c0_i32_0 : i32, i32
  }
  func.func @transform_6(%arg0: i32) -> (i32, i32) {
    %c0_i32 = arith.constant 0 : i32
    %c0_i32_0 = arith.constant 0 : i32
    %c0_i32_1 = arith.constant 0 : i32
    return %c0_i32, %c0_i32_0 : i32, i32
  }
  func.func @transform_7(%arg0: i32) -> (i32, i32, i32) {
    %c0_i32 = arith.constant 0 : i32
    %c0_i32_0 = arith.constant 0 : i32
    %c0_i32_1 = arith.constant 0 : i32
    return %arg0, %c0_i32, %c0_i32_0 : i32, i32, i32
  }
}

</mosaic_0001>

<bundles_post_ra>
// kernel: tpu_custom_call.1
= control target key start
LH: loop header
LB: loop body
LE: loop exit
PB: predicated region body
PF: predicated region fallthrough
CT: control target
= control target key end

     0   :  { %vm117_vm0 = vcmask 523264   ;;  %s1655_s20 = smov 96   ;;  %s1657_s21 = smov 64   ;;  %vm328_vm1 = vcmask 130048   ;;  %vm980_vm2 = vcmask 261120   ;;  %vm983_vm3 = vcmask 392192   ;;  %s2245_s0 = inlined_call_operand.vmem [shape: f32[2,64,16], index: 0, kind: input, shape index: {}]   ;;  %s2246_s1 = inlined_call_operand.vmem [shape: bf16[64,192], index: 1, kind: input, shape index: {}]   ;;  %s2247_s2 = inlined_call_operand.vmem [shape: f32[1,192], index: 2, kind: input, shape index: {}]   ;;  %s2248_s4 = inlined_call_operand.vmem [shape: f32[64,1], index: 4, kind: input, shape index: {}]   ;;  %s2249_s5 = inlined_call_operand.vmem [shape: f32[64,1], index: 5, kind: input, shape index: {}]   ;;  %s2250_s3 = inlined_call_operand.vmem [shape: bf16[64,64], index: 3, kind: input, shape index: {}]   ;;  %s2251_s6 = inlined_call_operand.vmem [shape: f32[64,1], index: 6, kind: input, shape index: {}]   ;;  %s2252_s7 = inlined_call_operand.vmem [shape: f32[2,64,16], index: 7, kind: output, shape index: {}]  }
   0x1   :  { %v44_v0 = vld [vmem:[%s2245_s0] sm:$0xff]  ;;  %v45_v1 = vld [vmem:[%s2245_s0 + $0x8] sm:$0xff]  ;;  %v46_v6 = vld [vmem:[%s2245_s0 + $0x10] sm:$0xff]  ;;  %s1658_s22 = smov 16   ;;  %s1659_s23 = smov 32  }
   0x2   :  { %v52_v2 = vpack.c.bf16 %v45_v1, %v44_v0  ;;  %v1418_v3 = vld [vmem:[%s2245_s0 + $0x40] sm:$0xff]  ;;  %v1419_v4 = vld [vmem:[%s2245_s0 + $0x48] sm:$0xff]  ;;  %v47_v7 = vld [vmem:[%s2245_s0 + $0x18] sm:$0xff]  ;;  %s1660_s24 = smov 48  }
   0x3   :  { %v158_v5 = vpack.c.bf16 %v1419_v4, %v1418_v3  ;;  %v1420_v8 = vld [vmem:[%s2245_s0 + $0x50] sm:$0xff]  ;;  %v1421_v9 = vld [vmem:[%s2245_s0 + $0x58] sm:$0xff]  ;;  %v53_v10 = vpack.c.bf16 %v47_v7, %v46_v6  ;;  %v1402_v15 = vld [vmem:[%s2246_s1 + $0x20] sm:$0xf] }
   0x4   :  { %61 = vxpose.xlu0.c.b16.start [1/4] (short) (narrow) %v52_v2, 16  ;;  %v159_v11 = vpack.c.bf16 %v1421_v9, %v1420_v8  ;;  %v1410_v12 = vld [vmem:[%s2246_s1 + $0x30] sm:$0xf]  ;;  %v1479_v13 = vld [vmem:[%s2246_s1 + $0x34] sm:$0xf0]  ;;  %v48_v20 = vld [vmem:[%s2245_s0 + $0x20] sm:$0xff] }
   0x5   :  { %162 = vxpose.xlu1.c.b16.start [1/4] (short) (narrow) %v158_v5, 16  ;;  %v1411_v14 = vor.u32 %v1479_v13, %v1410_v12  ;;  %v1477_v16 = vld [vmem:[%s2246_s1 + $0x24] sm:$0xf0]  ;;  %v1394_v18 = vld [vmem:[%s2246_s1 + $0x10] sm:$0xf]  ;;  %v1422_v25 = vld [vmem:[%s2245_s0 + $0x60] sm:$0xff] }
   0x6   :  { %v1403_v17 = vor.u32 %v1477_v16, %v1402_v15  ;;  %v1475_v19 = vld [vmem:[%s2246_s1 + $0x14] sm:$0xf0]  ;;  %v49_v22 = vld [vmem:[%s2245_s0 + $0x28] sm:$0xff]  ;;  %v1386_v23 = vld [vmem:[%s2246_s1] sm:$0xf] }
   0x7   :  { %125 = vmatpush.bf16.msra.mxu1 %v1411_v14  ;;  %185 = vmatpush.bf16.msra.mxu2 %v1411_v14  ;;  %v1395_v21 = vor.u32 %v1475_v19, %v1394_v18  ;;  %v1473_v24 = vld [vmem:[%s2246_s1 + $0x4] sm:$0xf0]  ;;  %v54_v27 = vpack.c.bf16 %v49_v22, %v48_v20  ;;  %v50_v30 = vld [vmem:[%s2245_s0 + $0x30] sm:$0xff]  ;;  %v51_v31 = vld [vmem:[%s2245_s0 + $0x38] sm:$0xff] }
   0x8   :  { %v1423_v26 = vld [vmem:[%s2245_s0 + $0x68] sm:$0xff]  ;;  %v1387_v28 = vor.u32 %v1473_v24, %v1386_v23  ;;  %v1424_v32 = vld [vmem:[%s2245_s0 + $0x70] sm:$0xff]  ;;  %v1425_v33 = vld [vmem:[%s2245_s0 + $0x78] sm:$0xff]  ;;  %v55_v34 = vpack.c.bf16 %v51_v31, %v50_v30 }
   0x9   :  { %v160_v29 = vpack.c.bf16 %v1423_v26, %v1422_v25  ;;  %v161_v35 = vpack.c.bf16 %v1425_v33, %v1424_v32  ;;  %v1478_v36 = vld [vmem:[%s2246_s1 + $0x34] sm:$0xf]  ;;  %v1412_v37 = vld [vmem:[%s2246_s1 + $0x38] sm:$0xf0]  ;;  %v1476_v39 = vld [vmem:[%s2246_s1 + $0x24] sm:$0xf] }
   0xa   :  { %v1415_v38 = vor.u32 %v1478_v36, %v1412_v37  ;;  %v1404_v40 = vld [vmem:[%s2246_s1 + $0x28] sm:$0xf0]  ;;  %v1474_v42 = vld [vmem:[%s2246_s1 + $0x14] sm:$0xf]  ;;  %v1396_v43 = vld [vmem:[%s2246_s1 + $0x18] sm:$0xf0] }
   0xb   :  { %126 = vmatpush.bf16.msra.mxu1 %v1403_v17  ;;  %186 = vmatpush.bf16.msra.mxu2 %v1403_v17  ;;  %v1407_v41 = vor.u32 %v1476_v39, %v1404_v40  ;;  %v1399_v44 = vor.u32 %v1474_v42, %v1396_v43  ;;  %v1472_v45 = vld [vmem:[%s2246_s1 + $0x4] sm:$0xf]  ;;  %v1388_v46 = vld [vmem:[%s2246_s1 + $0x8] sm:$0xf0]  ;;  %v35_v51 = vld [vmem:[%s2247_s2] sm:$0x3] }
   0xc   :  { %199 = vmatpush.bf16.msra.mxu3 %v1415_v38  ;;  %v1391_v47 = vor.u32 %v1472_v45, %v1388_v46  ;;  %v57_v52 = vperm.slane %v35_v51, 0  ;;  %s1654_s1 = smov 80   ;;  %v58_v60 = vperm.slane %v35_v51, 1  ;;  %s1656_s2 = smov 112  }
   0xf   :  { %127 = vmatpush.bf16.msra.mxu1 %v1395_v21  ;;  %187 = vmatpush.bf16.msra.mxu2 %v1395_v21 }
  0x10   :  { %200 = vmatpush.bf16.msra.mxu3 %v1407_v41 }
  0x13   :  { %128 = vmatpush.bf16.msra.mxu1 %v1387_v28  ;;  %188 = vmatpush.bf16.msra.mxu2 %v1387_v28 }
  0x14   :  { %62 = vxpose.xlu0.c.b16.cont [2/4] (short) (narrow) %v53_v10, 16  ;;  %201 = vmatpush.bf16.msra.mxu3 %v1399_v44 }
  0x15   :  { %163 = vxpose.xlu1.c.b16.cont [2/4] (short) (narrow) %v159_v11, 16 }
  0x17   :  { %139 = vmatpush.bf16.msrb.mxu1 %v1415_v38 }
  0x18   :  { %202 = vmatpush.bf16.msra.mxu3 %v1391_v47 }
  0x1b   :  { %140 = vmatpush.bf16.msrb.mxu1 %v1407_v41 }
  0x1f   :  { %141 = vmatpush.bf16.msrb.mxu1 %v1399_v44 }
  0x23   :  { %142 = vmatpush.bf16.msrb.mxu1 %v1391_v47 }
  0x24   :  { %63 = vxpose.xlu0.c.b16.cont [3/4] (short) (narrow) %v54_v27, 16 }
  0x25   :  { %164 = vxpose.xlu1.c.b16.cont [3/4] (short) (narrow) %v160_v29, 16 }
  0x34   :  { %64 = vxpose.xlu0.c.b16.end [4/4] (short) (narrow) %v55_v34, 16 }
  0x35   :  { %165 = vxpose.xlu1.c.b16.end [4/4] (short) (narrow) %v161_v35, 16 }
  0xb0   :  { %v69_v48 = vpop.trf.xlu0 }
  0xb1   :  { %1416 = vmatmul.msk.bf16.vlgmr.msra.gmra.mxu1 %vm117_vm0, %v69_v48  ;;  %v170_v49 = vpop.trf.xlu1 }
  0xb2   :  { %1426 = vmatmul.msk.bf16.vlgmr.msra.gmra.mxu2 %vm117_vm0, %v170_v49  ;;  %1427 = vmatmul.msk.bf16.vlgmr.msra.gmra.mxu3 %vm117_vm0, %v170_v49 }
  0xc1   :  { %1417 = vmatmul.msk.bf16.vlgmr.msrb.gmra.mxu1 %vm117_vm0, %v69_v48 }
 0x12e   :  { %v130_v50 = vpop.f32.mrf.mxu1 }
 0x12f   :  { %v131_v54 = vadd.f32 %v130_v50, %v57_v52 }
 0x131   :  { %v249_v20 = vpack.c.bf16 %v131_v54, %v131_v54 }
 0x133   :  { %v323_v22 = vunpack.c.l.b16 %v249_v20 }
 0x135   :  { %v204_v57 = vpop.f32.mrf.mxu3  ;;  %v190_v59 = vpop.f32.mrf.mxu2 }
 0x136   :  { %v132_v53 = vpop.f32.mrf.mxu1  ;;  %v205_v62 = vadd.f32 %v204_v57, %v58_v60  ;;  %v191_v12 = vadd.f32 %v190_v59, %v57_v52 }
 0x137   :  { %v133_v55 = vadd.f32 %v132_v53, %v57_v52 }
 0x138   :  { %v313_v4 = vpack.c.bf16 %v205_v62, %v205_v62  ;;  %v257_v24 = vpack.c.bf16 %v191_v12, %v191_v12 }
 0x139   :  { %v1493_v56 = vpack.i.bf16 %v133_v55, %v131_v54  ;;  %v250_v19 = vpack.c.bf16 %v133_v55, %v133_v55 }
 0x13a   :  { %v849_v9 = vunpack.c.l.b16 %v313_v4  ;;  %v432_v26 = vunpack.c.l.b16 %v257_v24 }
 0x13b   :  { %1494 = vrot.lane.b32.xlu2 %v1493_v56, %s1654_s1  ;;  %v324_v21 = vunpack.c.l.b16 %v250_v19 }
 0x13d   :  { %v206_v63 = vpop.f32.mrf.mxu3  ;;  %v192_v6 = vpop.f32.mrf.mxu2  ;;  %v1816_v23 = vpack.c.b16 %v324_v21, %v323_v22 }
 0x13e   :  { %v144_v58 = vpop.f32.mrf.mxu1  ;;  %v207_v0 = vadd.f32 %v206_v63, %v58_v60  ;;  %v193_v13 = vadd.f32 %v192_v6, %v57_v52 }
 0x13f   :  { %v145_v61 = vadd.f32 %v144_v58, %v58_v60 }
 0x140   :  { %v314_v5 = vpack.c.bf16 %v207_v0, %v207_v0  ;;  %v1808_v7 = vpack.i.bf16 %v207_v0, %v205_v62  ;;  %v1508_v18 = vpack.i.bf16 %v193_v13, %v191_v12  ;;  %v258_v25 = vpack.c.bf16 %v193_v13, %v193_v13 }
 0x141   :  { %v305_v3 = vpack.c.bf16 %v145_v61, %v145_v61 }
 0x142   :  { %v850_v10 = vunpack.c.l.b16 %v314_v5  ;;  %v433_v27 = vunpack.c.l.b16 %v258_v25 }
 0x143   :  { %1499 = vrot.lane.b32.xlu2 %v1493_v56, %s1655_s20  ;;  %v737_v14 = vunpack.c.l.b16 %v305_v3 }
 0x144   :  { %v851_v16 = vpack.c.b16 %v850_v10, %v849_v9  ;;  %v1820_v28 = vpack.c.b16 %v433_v27, %v432_v26 }
 0x146   :  { %v146_v1 = vpop.f32.mrf.mxu1 }
 0x147   :  { %v147_v2 = vadd.f32 %v146_v1, %v58_v60 }
 0x149   :  { %v306_v8 = vpack.c.bf16 %v147_v2, %v147_v2  ;;  %v1810_v11 = vpack.i.bf16 %v147_v2, %v145_v61 }
 0x14b   :  { %1504 = vrot.lane.b32.xlu2 %v1493_v56, %s1656_s2  ;;  %v738_v15 = vunpack.c.l.b16 %v306_v8 }
 0x14d   :  { %v739_v17 = vpack.c.b16 %v738_v15, %v737_v14 }
 0x14f   :  { %751 = vmatpush.bf16.msra.mxu0 %v739_v17 }
 0x153   :  { %863 = vmatpush.bf16.msrb.mxu0 %v851_v16  ;;  %1509 = vrot.lane.b32.xlu2 %v1508_v18, %s1655_s20 }
 0x15b   :  { %1514 = vrot.lane.b32.xlu2 %v1508_v18, %s1654_s1 }
 0x163   :  { %1519 = vrot.lane.b32.xlu2 %v1508_v18, %s1656_s2 }
 0x16b   :  { %326 = vrot.lane.b32.xlu2 %v1816_v23, %s1657_s21 }
 0x173   :  { %435 = vrot.lane.b32.xlu2 %v1820_v28, %s1657_s21 }
 0x195   :  { %v1495_v29 = vpop.permute.xlu2 %1494 }
 0x196   :  { %v1497_v30 = vunpack.i.h.bf16 %v1495_v29  ;;  %v1496_v31 = vunpack.i.l.bf16 %v1495_v29 }
 0x198   :  { %v256_v32 = vpack.c.bf16 %v1497_v30, %v1497_v30  ;;  %v255_v33 = vpack.c.bf16 %v1496_v31, %v1496_v31 }
 0x19a   :  { %v406_v34 = vunpack.c.l.b16 %v256_v32  ;;  %v405_v35 = vunpack.c.l.b16 %v255_v33 }
 0x19c   :  { %v1824_v36 = vpack.c.b16 %v406_v34, %v405_v35 }
 0x19d   :  { %v1500_v37 = vpop.permute.xlu2 %1499 }
 0x19e   :  { %v1502_v38 = vunpack.i.h.bf16 %v1500_v37  ;;  %v1501_v39 = vunpack.i.l.bf16 %v1500_v37  ;;  %408 = vrot.lane.b32.xlu0 %v1824_v36, %s1657_s21 }
 0x1a0   :  { %v254_v40 = vpack.c.bf16 %v1502_v38, %v1502_v38  ;;  %v253_v41 = vpack.c.bf16 %v1501_v39, %v1501_v39 }
 0x1a2   :  { %v379_v42 = vunpack.c.l.b16 %v254_v40  ;;  %v378_v43 = vunpack.c.l.b16 %v253_v41 }
 0x1a4   :  { %v1828_v44 = vpack.c.b16 %v379_v42, %v378_v43 }
 0x1a5   :  { %v1505_v45 = vpop.permute.xlu2 %1504 }
 0x1a6   :  { %v1507_v46 = vunpack.i.h.bf16 %v1505_v45  ;;  %v1506_v47 = vunpack.i.l.bf16 %v1505_v45  ;;  %381 = vrot.lane.b32.xlu1 %v1828_v44, %s1657_s21  ;;  %1529 = vrot.lane.b32.xlu0 %v1810_v11, %s1654_s1 }
 0x1a8   :  { %v252_v48 = vpack.c.bf16 %v1507_v46, %v1507_v46  ;;  %v251_v49 = vpack.c.bf16 %v1506_v47, %v1506_v47 }
 0x1aa   :  { %v352_v50 = vunpack.c.l.b16 %v252_v48  ;;  %v351_v51 = vunpack.c.l.b16 %v251_v49 }
 0x1ac   :  { %v353_v52 = vpack.c.b16 %v352_v50, %v351_v51 }
 0x1ad   :  { %v1510_v53 = vpop.permute.xlu2 %1509 }
 0x1ae   :  { %v1512_v54 = vunpack.i.h.bf16 %v1510_v53  ;;  %v1511_v55 = vunpack.i.l.bf16 %v1510_v53  ;;  %1524 = vrot.lane.b32.xlu1 %v1810_v11, %s1655_s20  ;;  %354 = vrot.lane.b32.xlu2 %v353_v52, %s1657_s21 }
 0x1b0   :  { %v262_v56 = vpack.c.bf16 %v1512_v54, %v1512_v54  ;;  %v261_v57 = vpack.c.bf16 %v1511_v55, %v1511_v55 }
 0x1b2   :  { %v487_v58 = vunpack.c.l.b16 %v262_v56  ;;  %v486_v59 = vunpack.c.l.b16 %v261_v57 }
 0x1b4   :  { %v1837_v60 = vpack.c.b16 %v487_v58, %v486_v59 }
 0x1b5   :  { %v1515_v61 = vpop.permute.xlu2 %1514 }
 0x1b6   :  { %v1517_v62 = vunpack.i.h.bf16 %v1515_v61  ;;  %v1516_v63 = vunpack.i.l.bf16 %v1515_v61  ;;  %489 = vrot.lane.b32.xlu2 %v1837_v60, %s1657_s21 }
 0x1b8   :  { %v264_v0 = vpack.c.bf16 %v1517_v62, %v1517_v62  ;;  %v263_v1 = vpack.c.bf16 %v1516_v63, %v1516_v63 }
 0x1ba   :  { %v514_v2 = vunpack.c.l.b16 %v264_v0  ;;  %v513_v3 = vunpack.c.l.b16 %v263_v1 }
 0x1bc   :  { %v1841_v4 = vpack.c.b16 %v514_v2, %v513_v3 }
 0x1bd   :  { %v1520_v5 = vpop.permute.xlu2 %1519 }
 0x1be   :  { %v1522_v6 = vunpack.i.h.bf16 %v1520_v5  ;;  %v1521_v8 = vunpack.i.l.bf16 %v1520_v5  ;;  %516 = vrot.lane.b32.xlu2 %v1841_v4, %s1657_s21 }
 0x1c0   :  { %v260_v9 = vpack.c.bf16 %v1522_v6, %v1522_v6  ;;  %v259_v10 = vpack.c.bf16 %v1521_v8, %v1521_v8 }
 0x1c2   :  { %v460_v12 = vunpack.c.l.b16 %v260_v9  ;;  %v459_v13 = vunpack.c.l.b16 %v259_v10 }
 0x1c4   :  { %v461_v14 = vpack.c.b16 %v460_v12, %v459_v13 }
 0x1c5   :  { %v327_v15 = vpop.permute.xlu2 %326 }
 0x1c6   :  { %462 = vrot.lane.b32.xlu2 %v461_v14, %s1657_s21  ;;  %v333_v16 = vsel %vm328_vm1, %v327_v15, 0 }
 0x1c7   :  { %342 = vmatpush.bf16.xpose.msrb.mxu2 %v333_v16 }
 0x1cd   :  { %v436_v17 = vpop.permute.xlu2 %435 }
 0x1ce   :  { %1534 = vrot.lane.b32.xlu2 %v1810_v11, %s1656_s2  ;;  %1428 = vmatmul.msk.bf16.vlgmr.msrb.gmra.mxu2 %vm328_vm1, %v1816_v23  ;;  %v441_v24 = vsel %vm328_vm1, %v436_v17, 0 }
 0x208   :  { %v355_v18 = vpop.permute.xlu2 %354 }
 0x209   :  { %v360_v19 = vsel %vm328_vm1, %v355_v18, 0 }
 0x20a   :  { %369 = vmatpush.bf16.xpose.msra.mxu1 %v360_v19 }
 0x210   :  { %v409_v20 = vpop.permute.xlu0 %408  ;;  %v490_v21 = vpop.permute.xlu2 %489 }
 0x211   :  { %1429 = vmatmul.msk.bf16.vlgmr.msra.gmra.mxu1 %vm328_vm1, %v353_v52  ;;  %v414_v22 = vsel %vm328_vm1, %v409_v20, 0  ;;  %v495_v11 = vsel %vm328_vm1, %v490_v21, 0 }
 0x212   :  { %423 = vmatpush.bf16.xpose.msrb.mxu3 %v414_v22 }
 0x218   :  { %v382_v25 = vpop.permute.xlu1 %381  ;;  %v1530_v26 = vpop.permute.xlu0 %1529 }
 0x219   :  { %v387_v23 = vsel %vm328_vm1, %v382_v25, 0  ;;  %v517_v27 = vpop.permute.xlu2 %516  ;;  %1431 = vmatmul.msk.bf16.vlgmr.msrb.gmra.mxu3 %vm328_vm1, %v1824_v36  ;;  %v1532_v30 = vunpack.i.h.bf16 %v1530_v26  ;;  %v1531_v31 = vunpack.i.l.bf16 %v1530_v26 }
 0x21a   :  { %450 = vmatpush.bf16.xpose.msra.mxu3 %v441_v24  ;;  %v522_v29 = vsel %vm328_vm1, %v517_v27, 0  ;;  %396 = vmatpush.bf16.xpose.msra.mxu2 %v387_v23 }
 0x21b   :  { %v312_v32 = vpack.c.bf16 %v1532_v30, %v1532_v30  ;;  %v311_v33 = vpack.c.bf16 %v1531_v31, %v1531_v31 }
 0x21d   :  { %v822_v41 = vunpack.c.l.b16 %v312_v32  ;;  %v821_v42 = vunpack.c.l.b16 %v311_v33 }
 0x21f   :  { %v823_v47 = vpack.c.b16 %v822_v41, %v821_v42 }
 0x220   :  { %v1525_v34 = vpop.permute.xlu1 %1524 }
 0x221   :  { %v1527_v35 = vunpack.i.h.bf16 %v1525_v34  ;;  %v1526_v37 = vunpack.i.l.bf16 %v1525_v34  ;;  %v463_v38 = vpop.permute.xlu2 %462  ;;  %1430 = vmatmul.msk.bf16.vlgmr.msra.gmra.mxu2 %vm328_vm1, %v1828_v44 }
 0x222   :  { %504 = vmatpush.bf16.xpose.msrb.mxu2 %v495_v11  ;;  %531 = vmatpush.bf16.xpose.msrb.mxu3 %v522_v29  ;;  %v468_v39 = vsel %vm328_vm1, %v463_v38, 0 }
 0x223   :  { %v310_v40 = vpack.c.bf16 %v1527_v35, %v1527_v35  ;;  %v309_v36 = vpack.c.bf16 %v1526_v37, %v1526_v37  ;;  %477 = vmatpush.bf16.xpose.msrb.mxu1 %v468_v39 }
 0x225   :  { %v794_v43 = vunpack.c.l.b16 %v310_v40  ;;  %v793_v45 = vunpack.c.l.b16 %v309_v36 }
 0x227   :  { %v795_v46 = vpack.c.b16 %v794_v43, %v793_v45 }
 0x229   :  { %v1535_v48 = vpop.permute.xlu2 %1534  ;;  %1432 = vmatmul.msk.bf16.vlgmr.msra.gmra.mxu3 %vm328_vm1, %v1820_v28 }
 0x22a   :  { %807 = vmatpush.bf16.msra.mxu2 %v795_v46  ;;  %v1537_v49 = vunpack.i.h.bf16 %v1535_v48  ;;  %v1536_v50 = vunpack.i.l.bf16 %v1535_v48  ;;  %1433 = vmatmul.msk.bf16.vlgmr.msrb.gmra.mxu1 %vm328_vm1, %v461_v14 }
 0x22b   :  { %835 = vmatpush.bf16.msra.mxu3 %v823_v47 }
 0x22c   :  { %v308_v44 = vpack.c.bf16 %v1537_v49, %v1537_v49  ;;  %v307_v51 = vpack.c.bf16 %v1536_v50, %v1536_v50 }
 0x22e   :  { %v766_v52 = vunpack.c.l.b16 %v308_v44  ;;  %v765_v53 = vunpack.c.l.b16 %v307_v51 }
 0x230   :  { %v767_v54 = vpack.c.b16 %v766_v52, %v765_v53 }
 0x231   :  { %1434 = vmatmul.msk.bf16.vlgmr.msrb.gmra.mxu2 %vm328_vm1, %v1837_v60 }
 0x232   :  { %779 = vmatpush.bf16.msra.mxu1 %v767_v54 }
 0x239   :  { %1435 = vmatmul.msk.bf16.vlgmr.msrb.gmra.mxu3 %vm328_vm1, %v1841_v4 }
 0x251   :  { %v1870_v55 = vpop.f32.mrf.mxu2 }
 0x252   :  { %v538_v28 = vsel %vm328_vm1, %v1870_v55, -inf }
 0x253   :  { %539 = vmax.xlane.f32.xlu1 %v538_v28 }
 0x259   :  { %v1874_v56 = vpop.f32.mrf.mxu2 }
 0x25a   :  { %v541_v57 = vsel %vm328_vm1, %v1874_v56, -inf }
 0x25b   :  { %542 = vmax.xlane.f32.xlu2 %v541_v57 }
 0x28e   :  { %v371_v58 = vpop.f32.mrf.mxu1 }
 0x28f   :  { %v544_v59 = vsel %vm328_vm1, %v371_v58, -inf }
 0x290   :  { %545 = vmax.xlane.f32.xlu2 %v544_v59 }
 0x296   :  { %v1879_v61 = vpop.f32.mrf.mxu1 }
 0x297   :  { %v547_v8 = vsel %vm328_vm1, %v1879_v61, -inf }
 0x29c   :  { %v425_v60 = vpop.f32.mrf.mxu3 }
 0x29d   :  { %v556_v4 = vsel %vm328_vm1, %v425_v60, -inf }
 0x2a4   :  { %v398_v62 = vpop.f32.mrf.mxu2  ;;  %v427_v63 = vpop.f32.mrf.mxu3 }
 0x2a5   :  { %v559_v0 = vsel %vm328_vm1, %v427_v63, -inf  ;;  %v550_v1 = vsel %vm328_vm1, %v398_v62, -inf }
 0x2a6   :  { %560 = vmax.xlane.f32.xlu1 %v559_v0  ;;  %551 = vmax.xlane.f32.xlu2 %v550_v1 }
 0x2a7   :  { %v479_v2 = vpop.f32.mrf.mxu1 }
 0x2a8   :  { %v568_v5 = vsel %vm328_vm1, %v479_v2, -inf }
 0x2ac   :  { %v1883_v3 = vpop.f32.mrf.mxu2  ;;  %v1895_v12 = vpop.f32.mrf.mxu3 }
 0x2ad   :  { %v553_v10 = vsel %vm328_vm1, %v1883_v3, -inf  ;;  %v562_v13 = vsel %vm328_vm1, %v1895_v12, -inf }
 0x2ae   :  { %557 = vmax.xlane.f32.xlu2 %v556_v4  ;;  %569 = vmax.xlane.f32.xlu1 %v568_v5 }
 0x2af   :  { %v1899_v14 = vpop.f32.mrf.mxu1 }
 0x2b0   :  { %v571_v15 = vsel %vm328_vm1, %v1899_v14, -inf }
 0x2b4   :  { %v1887_v6 = vpop.f32.mrf.mxu2  ;;  %v1907_v18 = vpop.f32.mrf.mxu3 }
 0x2b5   :  { %v574_v9 = vsel %vm328_vm1, %v1887_v6, -inf  ;;  %v565_v19 = vsel %vm328_vm1, %v1907_v18, -inf }
 0x2b6   :  { %548 = vmax.xlane.f32.xlu2 %v547_v8  ;;  %575 = vmax.xlane.f32.xlu0 %v574_v9 }
 0x2bc   :  { %v1903_v16 = vpop.f32.mrf.mxu2  ;;  %v1911_v20 = vpop.f32.mrf.mxu3 }
 0x2bd   :  { %v577_v17 = vsel %vm328_vm1, %v1903_v16, -inf  ;;  %v580_v21 = vsel %vm328_vm1, %v1911_v20, -inf }
 0x2be   :  { %554 = vmax.xlane.f32.xlu2 %v553_v10 }
 0x2c4   :  { %v1915_v22 = vpop.f32.mrf.mxu3 }
 0x2c5   :  { %v583_v24 = vsel %vm328_vm1, %v1915_v22, -inf }
 0x2c6   :  { %563 = vmax.xlane.f32.xlu2 %v562_v13  ;;  %v1925_v30 = vpop.xlane.xlu1 %539 }
 0x2ce   :  { %572 = vmax.xlane.f32.xlu2 %v571_v15  ;;  %v1919_v11 = vpop.xlane.xlu2 %542 }
 0x2d6   :  { %578 = vmax.xlane.f32.xlu2 %v577_v17 }
 0x2de   :  { %566 = vmax.xlane.f32.xlu2 %v565_v19 }
 0x2e6   :  { %581 = vmax.xlane.f32.xlu2 %v580_v21 }
 0x2ee   :  { %584 = vmax.xlane.f32.xlu2 %v583_v24 }
 0x303   :  { %v546_v25 = vpop.xlane.xlu2 %545 }
 0x304   :  { %v588_v23 = vsub.f32 %v371_v58, %v546_v25 }
 0x306   :  { %v606_v26 = vmul.f32 1.442695, %v588_v23 }
 0x308   :  { %1586 = vpow2.f32 %v606_v26 }
 0x30e   :  { %v1921_v27 = vpop.eup %1586 }
 0x30f   :  { %v640_v29 = vsel %vm328_vm1, %v1921_v27, 0.0 }
 0x310   :  { %641 = vadd.xlane.f32.xlu0 %v640_v29 }
 0x319   :  { %v561_v31 = vpop.xlane.xlu1 %560  ;;  %v552_v32 = vpop.xlane.xlu2 %551 }
 0x31a   :  { %v590_v33 = vsub.f32 %v398_v62, %v552_v32  ;;  %v593_v35 = vsub.f32 %v427_v63, %v561_v31 }
 0x31c   :  { %v610_v34 = vmul.f32 1.442695, %v590_v33  ;;  %v616_v37 = vmul.f32 1.442695, %v593_v35 }
 0x31e   :  { %1588 = vpow2.f32 %v610_v34 }
 0x31f   :  { %1590 = vpow2.f32 %v616_v37 }
 0x321   :  { %v558_v38 = vpop.xlane.xlu2 %557  ;;  %v570_v39 = vpop.xlane.xlu1 %569 }
 0x322   :  { %v592_v40 = vsub.f32 %v425_v60, %v558_v38  ;;  %v596_v42 = vsub.f32 %v479_v2, %v570_v39 }
 0x324   :  { %v614_v36 = vmul.f32 1.442695, %v592_v40  ;;  %v1927_v41 = vpop.eup %1588  ;;  %v622_v45 = vmul.f32 1.442695, %v596_v42 }
 0x325   :  { %v646_v43 = vsel %vm328_vm1, %v1927_v41, 0.0  ;;  %v1932_v48 = vpop.eup %1590 }
 0x326   :  { %1592 = vpow2.f32 %v614_v36  ;;  %647 = vadd.xlane.f32.xlu1 %v646_v43  ;;  %v655_v44 = vsel %vm328_vm1, %v1932_v48, 0.0 }
 0x327   :  { %1594 = vpow2.f32 %v622_v45 }
 0x329   :  { %v549_v46 = vpop.xlane.xlu2 %548  ;;  %v576_v52 = vpop.xlane.xlu0 %575 }
 0x32a   :  { %v589_v47 = vsub.f32 %v1879_v61, %v549_v46  ;;  %v598_v57 = vsub.f32 %v1887_v6, %v576_v52 }
 0x32c   :  { %v608_v49 = vmul.f32 1.442695, %v589_v47  ;;  %v1934_v50 = vpop.eup %1592  ;;  %v626_v62 = vmul.f32 1.442695, %v598_v57 }
 0x32d   :  { %v652_v51 = vsel %vm328_vm1, %v1934_v50, 0.0  ;;  %v1941_v28 = vpop.eup %1594 }
 0x32e   :  { %1596 = vpow2.f32 %v608_v49  ;;  %656 = vadd.xlane.f32.xlu1 %v655_v44  ;;  %653 = vadd.xlane.f32.xlu2 %v652_v51  ;;  %v664_v60 = vsel %vm328_vm1, %v1941_v28, 0.0 }
 0x331   :  { %v555_v53 = vpop.xlane.xlu2 %554 }
 0x332   :  { %v591_v54 = vsub.f32 %v1883_v3, %v555_v53 }
 0x334   :  { %v612_v58 = vmul.f32 1.442695, %v591_v54  ;;  %v1944_v59 = vpop.eup %1596 }
 0x335   :  { %v643_v61 = vsel %vm328_vm1, %v1944_v59, 0.0 }
 0x336   :  { %1598 = vpow2.f32 %v612_v58  ;;  %665 = vadd.xlane.f32.xlu1 %v664_v60  ;;  %644 = vadd.xlane.f32.xlu2 %v643_v61 }
 0x337   :  { %1600 = vpow2.f32 %v626_v62 }
 0x339   :  { %v564_v63 = vpop.xlane.xlu2 %563 }
 0x33a   :  { %v594_v38 = vsub.f32 %v1895_v12, %v564_v63 }
 0x33c   :  { %v1950_v0 = vpop.eup %1598  ;;  %v618_v40 = vmul.f32 1.442695, %v594_v38 }
 0x33d   :  { %v649_v1 = vsel %vm328_vm1, %v1950_v0, 0.0  ;;  %v1954_v3 = vpop.eup %1600 }
 0x33e   :  { %650 = vadd.xlane.f32.xlu0 %v649_v1  ;;  %v670_v6 = vsel %vm328_vm1, %v1954_v3, 0.0 }
 0x341   :  { %v573_v2 = vpop.xlane.xlu2 %572 }
 0x342   :  { %v597_v4 = vsub.f32 %v1899_v14, %v573_v2 }
 0x344   :  { %v624_v5 = vmul.f32 1.442695, %v597_v4 }
 0x346   :  { %1602 = vpow2.f32 %v624_v5  ;;  %671 = vadd.xlane.f32.xlu0 %v670_v6 }
 0x349   :  { %v579_v8 = vpop.xlane.xlu2 %578 }
 0x34a   :  { %v599_v9 = vsub.f32 %v1903_v16, %v579_v8 }
 0x34c   :  { %v1960_v10 = vpop.eup %1602  ;;  %v628_v13 = vmul.f32 1.442695, %v599_v9 }
 0x34d   :  { %v667_v15 = vsel %vm328_vm1, %v1960_v10, 0.0 }
 0x34e   :  { %1604 = vpow2.f32 %v628_v13  ;;  %668 = vadd.xlane.f32.xlu0 %v667_v15 }
 0x351   :  { %v567_v17 = vpop.xlane.xlu2 %566 }
 0x352   :  { %v595_v34 = vsub.f32 %v1907_v18, %v567_v17 }
 0x354   :  { %v1964_v19 = vpop.eup %1604  ;;  %v620_v35 = vmul.f32 1.442695, %v595_v34 }
 0x355   :  { %v673_v14 = vsel %vm328_vm1, %v1964_v19, 0.0 }
 0x356   :  { %674 = vadd.xlane.f32.xlu1 %v673_v14 }
 0x359   :  { %v582_v21 = vpop.xlane.xlu2 %581 }
 0x35a   :  { %v600_v24 = vsub.f32 %v1911_v20, %v582_v21  ;;  %v586_v20 = vsub.f32 %v1870_v55, %v1925_v30 }
 0x35c   :  { %v630_v25 = vmul.f32 1.442695, %v600_v24 }
 0x35e   :  { %1606 = vpow2.f32 %v630_v25 }
 0x361   :  { %v585_v16 = vpop.xlane.xlu2 %584 }
 0x362   :  { %v601_v23 = vsub.f32 %v1915_v22, %v585_v16  ;;  %v602_v22 = vmul.f32 1.442695, %v586_v20 }
 0x364   :  { %v1970_v26 = vpop.eup %1606  ;;  %v632_v29 = vmul.f32 1.442695, %v601_v23 }
 0x365   :  { %v676_v31 = vsel %vm328_vm1, %v1970_v26, 0.0 }
 0x366   :  { %1608 = vpow2.f32 %v632_v29  ;;  %677 = vadd.xlane.f32.xlu2 %v676_v31 }
 0x367   :  { %1610 = vpow2.f32 %v602_v22 }
 0x368   :  { %1612 = vpow2.f32 %v620_v35 }
 0x369   :  { %1614 = vpow2.f32 %v618_v40 }
 0x36c   :  { %v1974_v32 = vpop.eup %1608 }
 0x36d   :  { %v679_v33 = vsel %vm328_vm1, %v1974_v32, 0.0  ;;  %v1987_v37 = vpop.eup %1610 }
 0x36e   :  { %680 = vadd.xlane.f32.xlu0 %v679_v33  ;;  %v634_v39 = vsel %vm328_vm1, %v1987_v37, 0.0  ;;  %v1994_v55 = vpop.eup %1612 }
 0x36f   :  { %1539 = vrot.lane.b32.xlu1 %v1808_v7, %s1655_s20  ;;  %v661_v18 = vsel %vm328_vm1, %v1994_v55, 0.0  ;;  %v1998_v43 = vpop.eup %1614 }
 0x37e   :  { %1549 = vrot.lane.b32.xlu2 %v1808_v7, %s1656_s2 }
 0x382   :  { %1544 = vrot.lane.b32.xlu0 %v1808_v7, %s1654_s1  ;;  %v587_v7 = vsub.f32 %v1874_v56, %v1919_v11  ;;  %v658_v56 = vsel %vm328_vm1, %v1998_v43, 0.0 }
 0x383   :  { %v642_v45 = vpop.xlane.xlu0 %641 }
 0x384   :  { %v604_v30 = vmul.f32 1.442695, %v587_v7 }
 0x386   :  { %1616 = vpow2.f32 %v604_v30 }
 0x38c   :  { %v2002_v11 = vpop.eup %1616 }
 0x38d   :  { %v637_v52 = vsel %vm328_vm1, %v2002_v11, 0.0 }
 0x399   :  { %635 = vadd.xlane.f32.xlu1 %v634_v39  ;;  %v648_v36 = vpop.xlane.xlu1 %647 }
 0x3a1   :  { %662 = vadd.xlane.f32.xlu1 %v661_v18  ;;  %v657_v12 = vpop.xlane.xlu1 %656  ;;  %v654_v42 = vpop.xlane.xlu2 %653 }
 0x3a2   :  { %1618 = vrcp.f32 %v657_v12 }
 0x3a3   :  { %1620 = vrcp.f32 %v654_v42 }
 0x3a4   :  { %1622 = vrcp.f32 %v642_v45 }
 0x3a5   :  { %1624 = vrcp.f32 %v648_v36 }
 0x3a7   :  { %659 = vadd.xlane.f32.xlu2 %v658_v56 }
 0x3a8   :  { %v1619_v46 = vpop.eup %1618 }
 0x3a9   :  { %v1621_v47 = vpop.eup %1620  ;;  %v705_v49 = vmul.f32 %v1619_v46, %v1932_v48  ;;  %v645_v44 = vpop.xlane.xlu2 %644 }
 0x3aa   :  { %v704_v51 = vmul.f32 %v1621_v47, %v1934_v50  ;;  %v1623_v53 = vpop.eup %1622  ;;  %1626 = vrcp.f32 %v645_v44  ;;  %v666_v25 = vpop.xlane.xlu1 %665 }
 0x3ab   :  { %v721_v54 = vpack.c.bf16 %v705_v49, %v705_v49  ;;  %v700_v60 = vmul.f32 %v1623_v53, %v1921_v27  ;;  %v1625_v62 = vpop.eup %1624 }
 0x3ac   :  { %638 = vadd.xlane.f32.xlu0 %v637_v52  ;;  %v720_v57 = vpack.c.bf16 %v704_v51, %v704_v51  ;;  %v702_v4 = vmul.f32 %v1625_v62, %v1927_v41 }
 0x3ad   :  { %v817_v58 = vunpack.c.l.b16 %v721_v54  ;;  %v716_v2 = vpack.c.bf16 %v700_v60, %v700_v60 }
 0x3ae   :  { %v816_v61 = vunpack.c.l.b16 %v720_v57  ;;  %v718_v13 = vpack.c.bf16 %v702_v4, %v702_v4 }
 0x3af   :  { %v760_v6 = vunpack.c.l.b16 %v716_v2 }
 0x3b0   :  { %v818_v63 = vpack.c.b16 %v817_v58, %v816_v61  ;;  %v1627_v48 = vpop.eup %1626  ;;  %v788_v14 = vunpack.c.l.b16 %v718_v13 }
 0x3b1   :  { %v651_v1 = vpop.xlane.xlu0 %650  ;;  %v701_v50 = vmul.f32 %v1627_v48, %v1944_v59 }
 0x3b2   :  { %1628 = vrcp.f32 %v651_v1  ;;  %1439 = vmatmul.msk.bf16.vlgmr.msra.gmra.mxu3 %vm328_vm1, %v818_v63 }
 0x3b3   :  { %v717_v5 = vpack.c.bf16 %v701_v50, %v701_v50 }
 0x3b5   :  { %v761_v8 = vunpack.c.l.b16 %v717_v5 }
 0x3b7   :  { %v762_v15 = vpack.c.b16 %v761_v8, %v760_v6 }
 0x3b8   :  { %v1629_v9 = vpop.eup %1628 }
 0x3b9   :  { %v703_v27 = vmul.f32 %v1629_v9, %v1950_v0  ;;  %1437 = vmatmul.msk.bf16.vlgmr.msra.gmra.mxu1 %vm328_vm1, %v762_v15  ;;  %v672_v59 = vpop.xlane.xlu0 %671 }
 0x3bb   :  { %v719_v17 = vpack.c.bf16 %v703_v27, %v703_v27 }
 0x3bd   :  { %v789_v21 = vunpack.c.l.b16 %v719_v17 }
 0x3bf   :  { %v790_v24 = vpack.c.b16 %v789_v21, %v788_v14 }
 0x3c1   :  { %1438 = vmatmul.msk.bf16.vlgmr.msra.gmra.mxu2 %vm328_vm1, %v790_v24  ;;  %v669_v41 = vpop.xlane.xlu0 %668 }
 0x3c9   :  { %v675_v16 = vpop.xlane.xlu1 %674 }
 0x3ca   :  { %1630 = vrcp.f32 %v675_v16 }
 0x3cb   :  { %1632 = vrcp.f32 %v669_v41 }
 0x3cc   :  { %1634 = vrcp.f32 %v672_v59 }
 0x3cd   :  { %1636 = vrcp.f32 %v666_v25 }
 0x3d0   :  { %v1631_v29 = vpop.eup %1630 }
 0x3d1   :  { %v1633_v31 = vpop.eup %1632  ;;  %v711_v20 = vmul.f32 %v1631_v29, %v1964_v19 }
 0x3d2   :  { %v1635_v0 = vpop.eup %1634  ;;  %v709_v22 = vmul.f32 %v1633_v31, %v1960_v10 }
 0x3d3   :  { %v1637_v33 = vpop.eup %1636  ;;  %v710_v34 = vmul.f32 %v1635_v0, %v1954_v3  ;;  %v727_v36 = vpack.c.bf16 %v711_v20, %v711_v20 }
 0x3d4   :  { %v708_v38 = vmul.f32 %v1637_v33, %v1941_v28  ;;  %v725_v12 = vpack.c.bf16 %v709_v22, %v709_v22 }
 0x3d5   :  { %v726_v56 = vpack.c.bf16 %v710_v34, %v710_v34  ;;  %v901_v3 = vunpack.c.l.b16 %v727_v36 }
 0x3d6   :  { %v724_v19 = vpack.c.bf16 %v708_v38, %v708_v38  ;;  %v873_v28 = vunpack.c.l.b16 %v725_v12 }
 0x3d7   :  { %v900_v54 = vunpack.c.l.b16 %v726_v56 }
 0x3d8   :  { %v872_v58 = vunpack.c.l.b16 %v724_v19 }
 0x3d9   :  { %v678_v23 = vpop.xlane.xlu2 %677  ;;  %v902_v60 = vpack.c.b16 %v901_v3, %v900_v54  ;;  %v1661_v54 = vmov 0  }
 0x3da   :  { %v874_v61 = vpack.c.b16 %v873_v28, %v872_v58  ;;  %1585 = vset.pattern.permute.xlu1 %v1661_v54  ;;  %1583 = vset.pattern.permute.xlu2 %v1661_v54 }
 0x3db   :  { %1584 = vset.pattern.permute.xlu0 %v1661_v54  ;;  %v1483_v54 = vld [vmem:[%s2250_s3 + $0x18] sm:$0xff] }
 0x3e1   :  { %v1540_v35 = vpop.permute.xlu1 %1539  ;;  %v1550_v7 = vpop.permute.xlu2 %1549 }
 0x3e2   :  { %v1542_v39 = vunpack.i.h.bf16 %v1540_v35  ;;  %v1541_v40 = vunpack.i.l.bf16 %v1540_v35  ;;  %v1552_v30 = vunpack.i.h.bf16 %v1550_v7  ;;  %v1551_v18 = vunpack.i.l.bf16 %v1550_v7  ;;  %v681_v44 = vpop.xlane.xlu0 %680 }
 0x3e3   :  { %1638 = vrcp.f32 %v681_v44 }
 0x3e4   :  { %v318_v42 = vpack.c.bf16 %v1542_v39, %v1542_v39  ;;  %v317_v45 = vpack.c.bf16 %v1541_v40, %v1541_v40  ;;  %v316_v46 = vpack.c.bf16 %v1552_v30, %v1552_v30  ;;  %v315_v47 = vpack.c.bf16 %v1551_v18, %v1551_v18 }
 0x3e5   :  { %1640 = vrcp.f32 %v678_v23 }
 0x3e6   :  { %v906_v49 = vunpack.c.l.b16 %v318_v42  ;;  %v905_v10 = vunpack.c.l.b16 %v317_v45  ;;  %v878_v51 = vunpack.c.l.b16 %v316_v46  ;;  %v877_v52 = vunpack.c.l.b16 %v315_v47 }
 0x3e8   :  { %v907_v53 = vpack.c.b16 %v906_v49, %v905_v10  ;;  %v879_v57 = vpack.c.b16 %v878_v51, %v877_v52 }
 0x3e9   :  { %v1639_v62 = vpop.eup %1638 }
 0x3ea   :  { %919 = vmatpush.bf16.msrb.mxu2 %v907_v53  ;;  %891 = vmatpush.bf16.msrb.mxu1 %v879_v57  ;;  %v713_v1 = vmul.f32 %v1639_v62, %v1974_v32  ;;  %v1020_v57 = vld [vmem:[%s2248_s4 + $0x10] sm:$0xff] }
 0x3eb   :  { %v1641_v63 = vpop.eup %1640 }
 0x3ec   :  { %v712_v48 = vmul.f32 %v1641_v63, %v1970_v26  ;;  %v729_v5 = vpack.c.bf16 %v713_v1, %v713_v1 }
 0x3ed   :  { %1442 = vmatmul.msk.bf16.vlgmr.msrb.gmra.mxu2 %vm328_vm1, %v902_v60  ;;  %1441 = vmatmul.msk.bf16.vlgmr.msrb.gmra.mxu1 %vm328_vm1, %v874_v61  ;;  %v1022_v61 = vld [vmem:[%s2248_s4 + $0x20] sm:$0xff] }
 0x3ee   :  { %v728_v9 = vpack.c.bf16 %v712_v48, %v712_v48  ;;  %v929_v27 = vunpack.c.l.b16 %v729_v5  ;;  %v1018_v5 = vld [vmem:[%s2248_s4] sm:$0xff] }
 0x3f0   :  { %v928_v14 = vunpack.c.l.b16 %v728_v9 }
 0x3f2   :  { %v930_v21 = vpack.c.b16 %v929_v27, %v928_v14 }
 0x3f4   :  { %v1545_v2 = vpop.permute.xlu0 %1544 }
 0x3f5   :  { %v1547_v50 = vunpack.i.h.bf16 %v1545_v2  ;;  %v1546_v4 = vunpack.i.l.bf16 %v1545_v2 }
 0x3f7   :  { %v320_v6 = vpack.c.bf16 %v1547_v50, %v1547_v50  ;;  %v319_v8 = vpack.c.bf16 %v1546_v4, %v1546_v4 }
 0x3f9   :  { %v934_v13 = vunpack.c.l.b16 %v320_v6  ;;  %v933_v15 = vunpack.c.l.b16 %v319_v8  ;;  %v1019_v6 = vld [vmem:[%s2248_s4 + $0x8] sm:$0xff] }
 0x3fb   :  { %v935_v17 = vpack.c.b16 %v934_v13, %v933_v15 }
 0x3fd   :  { %947 = vmatpush.bf16.msrb.mxu3 %v935_v17 }
 0x400   :  { %1443 = vmatmul.msk.bf16.vlgmr.msrb.gmra.mxu3 %vm328_vm1, %v930_v21 }
 0x40c   :  { %v636_v24 = vpop.xlane.xlu1 %635 }
 0x40d   :  { %1642 = vrcp.f32 %v636_v24 }
 0x413   :  { %v1643_v26 = vpop.eup %1642 }
 0x414   :  { %v698_v59 = vmul.f32 %v1643_v26, %v1987_v37  ;;  %v663_v41 = vpop.xlane.xlu1 %662  ;;  %v1025_v26 = vld [vmem:[%s2248_s4 + $0x38] sm:$0xff] }
 0x416   :  { %v714_v29 = vpack.c.bf16 %v698_v59, %v698_v59 }
 0x418   :  { %v732_v0 = vunpack.c.l.b16 %v714_v29 }
 0x41a   :  { %v660_v25 = vpop.xlane.xlu2 %659 }
 0x41f   :  { %v639_v32 = vpop.xlane.xlu0 %638 }
 0x420   :  { %1644 = vrcp.f32 %v639_v32 }
 0x421   :  { %1646 = vrcp.f32 %v660_v25 }
 0x422   :  { %1648 = vrcp.f32 %v663_v41  ;;  %v1021_v41 = vld [vmem:[%s2248_s4 + $0x18] sm:$0xff] }
 0x426   :  { %v1645_v16 = vpop.eup %1644 }
 0x427   :  { %v699_v23 = vmul.f32 %v1645_v16, %v2002_v11  ;;  %v1647_v22 = vpop.eup %1646 }
 0x428   :  { %v1649_v34 = vpop.eup %1648  ;;  %v706_v35 = vmul.f32 %v1647_v22, %v1998_v43 }
 0x429   :  { %v715_v31 = vpack.c.bf16 %v699_v23, %v699_v23  ;;  %v707_v37 = vmul.f32 %v1649_v34, %v1994_v55  ;;  %v1024_v23 = vld [vmem:[%s2248_s4 + $0x30] sm:$0xff] }
 0x42a   :  { %v722_v38 = vpack.c.bf16 %v706_v35, %v706_v35 }
 0x42b   :  { %v733_v33 = vunpack.c.l.b16 %v715_v31  ;;  %v723_v39 = vpack.c.bf16 %v707_v37, %v707_v37 }
 0x42c   :  { %v844_v40 = vunpack.c.l.b16 %v722_v38 }
 0x42d   :  { %v734_v20 = vpack.c.b16 %v733_v33, %v732_v0  ;;  %v845_v7 = vunpack.c.l.b16 %v723_v39  ;;  %v1221_v0 = vld [vmem:[%s2249_s5 + $0x10] sm:$0xff] }
 0x42f   :  { %1436 = vmatmul.msk.bf16.vlgmr.msra.gmra.mxu0 %vm328_vm1, %v734_v20  ;;  %v846_v11 = vpack.c.b16 %v845_v7, %v844_v40 }
 0x435   :  { %v837_v56 = vpop.f32.mrf.mxu3 }
 0x436   :  { %v781_v36 = vpop.f32.mrf.mxu1 }
 0x43d   :  { %v839_v19 = vpop.f32.mrf.mxu3 }
 0x43e   :  { %v783_v18 = vpop.f32.mrf.mxu1  ;;  %v1578_v10 = vpack.i.bf16 %v839_v19, %v837_v56  ;;  %v1223_v56 = vld [vmem:[%s2249_s5 + $0x20] sm:$0xff]  ;;  %v1481_v19 = vld [vmem:[%s2250_s3 + $0x8] sm:$0xff] }
 0x43f   :  { %1440 = vmatmul.msk.bf16.vlgmr.msrb.gmra.mxu0 %vm328_vm1, %v846_v11  ;;  %v1568_v49 = vpack.i.bf16 %v783_v18, %v781_v36  ;;  %v1023_v36 = vld [vmem:[%s2248_s4 + $0x28] sm:$0xff] }
 0x444   :  { %v809_v30 = vpop.f32.mrf.mxu2 }
 0x44c   :  { %v811_v12 = vpop.f32.mrf.mxu2 }
 0x44d   :  { %v1573_v3 = vpack.i.bf16 %v811_v12, %v809_v30  ;;  %v1220_v30 = vld [vmem:[%s2249_s5 + $0x8] sm:$0xff] }
 0x44e   :  { %v1224_v12 = vld [vmem:[%s2249_s5 + $0x28] sm:$0xff] }
 0x46a   :  { %v893_v42 = vpop.f32.mrf.mxu1 }
 0x470   :  { %v921_v45 = vpop.f32.mrf.mxu2 }
 0x472   :  { %v895_v46 = vpop.f32.mrf.mxu1 }
 0x473   :  { %v1553_v47 = vpack.i.bf16 %v895_v46, %v893_v42  ;;  %v1480_v42 = vld [vmem:[%s2250_s3] sm:$0xff] }
 0x474   :  { %v1275_v46 = vld [vmem:[%s2251_s6] sm:$0xff] }
 0x475   :  { %1554 = vrot.lane.b32.xlu0 %v1553_v47, %s1658_s22  ;;  %v1222_v47 = vld [vmem:[%s2249_s5 + $0x18] sm:$0xff] }
 0x478   :  { %v923_v43 = vpop.f32.mrf.mxu2 }
 0x479   :  { %v1558_v55 = vpack.i.bf16 %v923_v43, %v921_v45  ;;  %v1219_v45 = vld [vmem:[%s2249_s5] sm:$0xff]  ;;  %v1226_v43 = vld [vmem:[%s2249_s5 + $0x38] sm:$0xff] }
 0x47b   :  { %1559 = vrot.lane.b32.xlu1 %v1558_v55, %s1659_s23  ;;  %v1278_v55 = vld [vmem:[%s2251_s6 + $0x18] sm:$0xff] }
 0x47d   :  { %1569 = vrot.lane.b32.xlu0 %v1568_v49, %s1658_s22  ;;  %v1225_v49 = vld [vmem:[%s2249_s5 + $0x30] sm:$0xff] }
 0x483   :  { %1579 = vrot.lane.b32.xlu1 %v1578_v10, %s1660_s24  ;;  %v949_v44 = vpop.f32.mrf.mxu3  ;;  %v1277_v10 = vld [vmem:[%s2251_s6 + $0x10] sm:$0xff] }
 0x485   :  { %1574 = vrot.lane.b32.xlu0 %v1573_v3, %s1659_s23  ;;  %v1276_v3 = vld [vmem:[%s2251_s6 + $0x8] sm:$0xff] }
 0x48b   :  { %v951_v51 = vpop.f32.mrf.mxu3  ;;  %1038 = vperm.xlu1 %1585, %v1020_v57  }
 0x48c   :  { %v1563_v52 = vpack.i.bf16 %v951_v51, %v949_v44  ;;  %v1281_v44 = vld [vmem:[%s2251_s6 + $0x30] sm:$0xff]  ;;  %v1280_v51 = vld [vmem:[%s2251_s6 + $0x28] sm:$0xff] }
 0x48d   :  { %1033 = vperm.xlu0 %1584, %v1019_v6  }
 0x48e   :  { %1564 = vrot.lane.b32.xlu2 %v1563_v52, %s1660_s24  ;;  %v1482_v52 = vld [vmem:[%s2250_s3 + $0x10] sm:$0xff] }
 0x493   :  { %1048 = vperm.xlu1 %1585, %v1022_v61  }
 0x495   :  { %1058 = vperm.xlu0 %1584, %v1024_v23  }
 0x496   :  { %1028 = vperm.xlu2 %1583, %v1018_v5  }
 0x49b   :  { %1063 = vperm.xlu1 %1585, %v1025_v26  }
 0x49d   :  { %1234 = vperm.xlu0 %1584, %v1220_v30  }
 0x49e   :  { %1043 = vperm.xlu2 %1583, %v1021_v41  }
 0x4a3   :  { %1239 = vperm.xlu1 %1585, %v1221_v0  }
 0x4a5   :  { %1249 = vperm.xlu0 %1584, %v1223_v56  }
 0x4a6   :  { %1053 = vperm.xlu2 %1583, %v1023_v36  }
 0x4ab   :  { %1254 = vperm.xlu1 %1585, %v1224_v12  }
 0x4ac   :  { %v753_v28 = vpop.f32.mrf.mxu0 }
 0x4ad   :  { %1264 = vperm.xlu0 %1584, %v1226_v43  }
 0x4ae   :  { %1229 = vperm.xlu2 %1583, %v1219_v45  }
 0x4b3   :  { %1285 = vperm.xlu1 %1585, %v1275_v46  }
 0x4b4   :  { %v755_v53 = vpop.f32.mrf.mxu0 }
 0x4b5   :  { %1295 = vperm.xlu0 %1584, %v1277_v10  }
 0x4b6   :  { %1244 = vperm.xlu2 %1583, %v1222_v47  }
 0x4bb   :  { %1300 = vperm.xlu1 %1585, %v1278_v55  }
 0x4bc   :  { %v865_v58 = vpop.f32.mrf.mxu0 }
 0x4bd   :  { %1310 = vperm.xlu0 %1584, %v1280_v51  }
 0x4be   :  { %1259 = vperm.xlu2 %1583, %v1225_v49  }
 0x4c3   :  { %1315 = vperm.xlu1 %1585, %v1281_v44  }
 0x4c4   :  { %v867_v2 = vpop.f32.mrf.mxu0 }
 0x4c6   :  { %1290 = vperm.xlu2 %1583, %v1276_v3  }
 0x4e7   :  { %v1555_v60 = vpop.permute.xlu0 %1554 }
 0x4e8   :  { %v1557_v62 = vunpack.i.h.bf16 %v1555_v60  ;;  %v1556_v63 = vunpack.i.l.bf16 %v1555_v60  ;;  %v1565_v1 = vpop.permute.xlu2 %1564 }
 0x4e9   :  { %v1567_v13 = vunpack.i.h.bf16 %v1565_v1  ;;  %v1566_v15 = vunpack.i.l.bf16 %v1565_v1 }
 0x4ea   :  { %v1011_v8 = vsel %vm328_vm1, %v867_v2, %v1557_v62  ;;  %v1010_v9 = vsel %vm328_vm1, %v865_v58, %v1556_v63 }
 0x4ed   :  { %v1560_v48 = vpop.permute.xlu1 %1559 }
 0x4ee   :  { %v1562_v50 = vunpack.i.h.bf16 %v1560_v48  ;;  %v1561_v4 = vunpack.i.l.bf16 %v1560_v48 }
 0x4ef   :  { %v1570_v14 = vpop.permute.xlu0 %1569 }
 0x4f0   :  { %v1012_v27 = vsel %vm980_vm2, %v1010_v9, %v1561_v4  ;;  %v1013_v17 = vsel %vm980_vm2, %v1011_v8, %v1562_v50  ;;  %v1572_v25 = vunpack.i.h.bf16 %v1570_v14  ;;  %v1571_v16 = vunpack.i.l.bf16 %v1570_v14  ;;  %v1029_v62 = vpop.permute.xlu2 %1028 }
 0x4f1   :  { %v1014_v21 = vsel %vm983_vm3, %v1012_v27, %v1566_v15  ;;  %v1015_v24 = vsel %vm983_vm3, %v1013_v17, %v1567_v13  ;;  %v1662_v15 = vmov 64.0  }
 0x4f2   :  { %v1017_v32 = vpack.c.bf16 %v1015_v24, %v1014_v21  ;;  %v979_v22 = vsel %vm328_vm1, %v755_v53, %v1572_v25  ;;  %v978_v34 = vsel %vm328_vm1, %v753_v28, %v1571_v16  ;;  %v1279_v28 = vld [vmem:[%s2251_s6 + $0x20] sm:$0xff]  ;;  %v1282_v53 = vld [vmem:[%s2251_s6 + $0x38] sm:$0xff]  ;;  %1650 = vrcp.f32 %v1662_v15 }
 0x4f3   :  { %1305 = vperm.xlu2 %1583, %v1279_v28  }
 0x4f4   :  { %v1102_v59 = vsel %vm117_vm0, %v1017_v32, 0 }
 0x4f5   :  { %1110 = vmatpush.bf16.xpose.msra.mxu0 %v1102_v59  ;;  %v1580_v29 = vpop.permute.xlu1 %1579 }
 0x4f6   :  { %v1582_v35 = vunpack.i.h.bf16 %v1580_v29  ;;  %v1581_v37 = vunpack.i.l.bf16 %v1580_v29 }
 0x4f7   :  { %v1575_v31 = vpop.permute.xlu0 %1574 }
 0x4f8   :  { %v1577_v33 = vunpack.i.h.bf16 %v1575_v31  ;;  %v1576_v20 = vunpack.i.l.bf16 %v1575_v31  ;;  %v1044_v48 = vpop.permute.xlu2 %1043  ;;  %v1651_v29 = vpop.eup %1650 }
 0x4f9   :  { %vm1159_vm4 = vweird.f32 %v1651_v29 }
 0x4fa   :  { %v981_v38 = vsel %vm980_vm2, %v978_v34, %v1576_v20  ;;  %v982_v39 = vsel %vm980_vm2, %v979_v22, %v1577_v33  ;;  %v1155_v22 = vmul.f32 64.0, %v1651_v29 }
 0x4fb   :  { %v984_v40 = vsel %vm983_vm3, %v981_v38, %v1581_v37  ;;  %v985_v7 = vsel %vm983_vm3, %v982_v39, %v1582_v35  ;;  %1320 = vperm.xlu2 %1583, %v1282_v53  }
 0x4fc   :  { %v1016_v11 = vpack.c.bf16 %v985_v7, %v984_v40  ;;  %v1156_v7 = vsub.f32 1.0, %v1155_v22 }
 0x4fd   :  { %v1039_v1 = vpop.permute.xlu1 %1038 }
 0x4fe   :  { %v1099_v18 = vsel %vm117_vm0, %v1016_v11, 0  ;;  %v1157_v30 = vmul.f32 %v1651_v29, %v1156_v7 }
 0x4ff   :  { %1111 = vmatpush.bf16.xpose.msra.mxu0 %v1099_v18  ;;  %v1034_v2 = vpop.permute.xlu0 %1033 }
 0x500   :  { %v1054_v21 = vpop.permute.xlu2 %1053 }
 0x505   :  { %v1049_v13 = vpop.permute.xlu1 %1048 }
 0x506   :  { %1460 = vmatmul.msk.bf16.vlgmr.msra.gmra.mxu0 %vm117_vm0, %v1480_v42  ;;  %v1158_v42 = vadd.f32 %v1651_v29, %v1157_v30 }
 0x507   :  { %v1059_v16 = vpop.permute.xlu0 %1058 }
 0x508   :  { %v1160_v46 = vsel %vm1159_vm4, %v1651_v29, %v1158_v42 }
 0x50d   :  { %v1064_v34 = vpop.permute.xlu1 %1063 }
 0x516   :  { %1461 = vmatmul.msk.bf16.gmra.mxu0 %vm117_vm0, %v1481_v19 }
 0x526   :  { %1462 = vmatmul.msk.bf16.gmra.mxu0 %vm117_vm0, %v1482_v52 }
 0x536   :  { %1463 = vmatmul.msk.bf16.gmra.mxu0 %vm117_vm0, %v1483_v54 }
 0x583   :  { %v1113_v57 = vpop.f32.mrf.mxu0 }
 0x584   :  { %v1114_v5 = vadd.f32 %v1113_v57, %v1029_v62 }
 0x586   :  { %v1133_v27 = vsel %vm980_vm2, %v1114_v5, 0.0 }
 0x58b   :  { %v1115_v58 = vpop.f32.mrf.mxu0 }
 0x58c   :  { %v1116_v4 = vadd.f32 %v1115_v58, %v1034_v2 }
 0x58e   :  { %v1134_v8 = vsel %vm980_vm2, %v1116_v4, 0.0 }
 0x58f   :  { %v1135_v24 = vadd.f32 %v1134_v8, %v1133_v27 }
 0x593   :  { %v1118_v60 = vpop.f32.mrf.mxu0 }
 0x594   :  { %v1119_v6 = vadd.f32 %v1118_v60, %v1039_v1 }
 0x596   :  { %v1136_v17 = vsel %vm980_vm2, %v1119_v6, 0.0 }
 0x597   :  { %v1137_v25 = vadd.f32 %v1136_v17, %v1135_v24 }
 0x59b   :  { %v1120_v61 = vpop.f32.mrf.mxu0 }
 0x59c   :  { %v1121_v9 = vadd.f32 %v1120_v61, %v1044_v48 }
 0x59e   :  { %v1138_v26 = vsel %vm980_vm2, %v1121_v9, 0.0 }
 0x59f   :  { %v1139_v31 = vadd.f32 %v1138_v26, %v1137_v25 }
 0x5a3   :  { %v1123_v63 = vpop.f32.mrf.mxu0 }
 0x5a4   :  { %v1124_v14 = vadd.f32 %v1123_v63, %v1049_v13 }
 0x5a6   :  { %v1140_v41 = vsel %vm980_vm2, %v1124_v14, 0.0 }
 0x5a7   :  { %v1141_v33 = vadd.f32 %v1140_v41, %v1139_v31 }
 0x5ab   :  { %v1125_v50 = vpop.f32.mrf.mxu0 }
 0x5ac   :  { %v1126_v59 = vadd.f32 %v1125_v50, %v1054_v21 }
 0x5ae   :  { %v1142_v0 = vsel %vm980_vm2, %v1126_v59, 0.0 }
 0x5af   :  { %v1143_v35 = vadd.f32 %v1142_v0, %v1141_v33 }
 0x5b3   :  { %v1128_v32 = vpop.f32.mrf.mxu0 }
 0x5b4   :  { %v1129_v23 = vadd.f32 %v1128_v32, %v1059_v16 }
 0x5b6   :  { %v1144_v20 = vsel %vm980_vm2, %v1129_v23, 0.0 }
 0x5b7   :  { %v1145_v39 = vadd.f32 %v1144_v20, %v1143_v35 }
 0x5bb   :  { %v1130_v37 = vpop.f32.mrf.mxu0 }
 0x5bc   :  { %v1131_v38 = vadd.f32 %v1130_v37, %v1064_v34 }
 0x5be   :  { %v1146_v40 = vsel %vm980_vm2, %v1131_v38, 0.0 }
 0x5bf   :  { %v1147_v11 = vadd.f32 %v1146_v40, %v1145_v39 }
 0x5c1   :  { %v1148_v36 = vrot.slane %v1147_v11, 4 }
 0x5c3   :  { %v1149_v18 = vadd.f32 %v1148_v36, %v1147_v11 }
 0x5c5   :  { %v1150_v12 = vrot.slane %v1149_v18, 2 }
 0x5c7   :  { %v1151_v45 = vadd.f32 %v1150_v12, %v1149_v18 }
 0x5c9   :  { %v1152_v56 = vrot.slane %v1151_v45, 1 }
 0x5cb   :  { %v1153_v47 = vadd.f32 %v1152_v56, %v1151_v45 }
 0x5cd   :  { %v1161_v43 = vmul.f32 %v1160_v46, %v1153_v47 }
 0x5cf   :  { %v2140_v55 = vsub.f32 %v1114_v5, %v1161_v43  ;;  %v2142_v19 = vsub.f32 %v1116_v4, %v1161_v43  ;;  %v2144_v49 = vsub.f32 %v1119_v6, %v1161_v43  ;;  %v2146_v10 = vsub.f32 %v1121_v9, %v1161_v43  ;;  %v1230_v4 = vpop.permute.xlu2 %1229 }
 0x5d0   :  { %v2148_v44 = vsub.f32 %v1124_v14, %v1161_v43  ;;  %v1167_v28 = vsub.f32 %v1126_v59, %v1161_v43  ;;  %v1168_v60 = vsub.f32 %v1129_v23, %v1161_v43  ;;  %v1169_v1 = vsub.f32 %v1131_v38, %v1161_v43  ;;  %v1235_v14 = vpop.permute.xlu0 %1234  ;;  %v1240_v59 = vpop.permute.xlu1 %1239 }
 0x5d1   :  { %v1170_v3 = vmul.f32 %v2140_v55, %v2140_v55  ;;  %v1171_v51 = vmul.f32 %v2142_v19, %v2142_v19  ;;  %v1172_v52 = vmul.f32 %v2144_v49, %v2144_v49  ;;  %v1173_v53 = vmul.f32 %v2146_v10, %v2146_v10 }
 0x5d2   :  { %v1174_v61 = vmul.f32 %v2148_v44, %v2148_v44  ;;  %v1175_v48 = vmul.f32 %v1167_v28, %v1167_v28  ;;  %v1176_v5 = vmul.f32 %v1168_v60, %v1168_v60  ;;  %v1177_v9 = vmul.f32 %v1169_v1, %v1169_v1 }
 0x5d3   :  { %v1178_v54 = vsel %vm980_vm2, %v1170_v3, 0.0  ;;  %v1179_v57 = vsel %vm980_vm2, %v1171_v51, 0.0  ;;  %v1181_v62 = vsel %vm980_vm2, %v1172_v52, 0.0  ;;  %v1183_v2 = vsel %vm980_vm2, %v1173_v53, 0.0 }
 0x5d4   :  { %v1180_v58 = vadd.f32 %v1179_v57, %v1178_v54  ;;  %v1185_v6 = vsel %vm980_vm2, %v1174_v61, 0.0  ;;  %v1187_v13 = vsel %vm980_vm2, %v1175_v48, 0.0  ;;  %v1189_v27 = vsel %vm980_vm2, %v1176_v5, 0.0 }
 0x5d5   :  { %v1191_v21 = vsel %vm980_vm2, %v1177_v9, 0.0 }
 0x5d6   :  { %v1182_v63 = vadd.f32 %v1181_v62, %v1180_v58 }
 0x5d7   :  { %v1245_v26 = vpop.permute.xlu2 %1244 }
 0x5d8   :  { %v1184_v50 = vadd.f32 %v1183_v2, %v1182_v63  ;;  %v1250_v23 = vpop.permute.xlu0 %1249  ;;  %v1255_v33 = vpop.permute.xlu1 %1254 }
 0x5da   :  { %v1186_v8 = vadd.f32 %v1185_v6, %v1184_v50 }
 0x5dc   :  { %v1188_v15 = vadd.f32 %v1187_v13, %v1186_v8 }
 0x5de   :  { %v1190_v17 = vadd.f32 %v1189_v27, %v1188_v15 }
 0x5df   :  { %v1260_v0 = vpop.permute.xlu2 %1259 }
 0x5e0   :  { %v1192_v24 = vadd.f32 %v1191_v21, %v1190_v17  ;;  %v1265_v34 = vpop.permute.xlu0 %1264  ;;  %v1286_v38 = vpop.permute.xlu1 %1285 }
 0x5e2   :  { %v1193_v32 = vrot.slane %v1192_v24, 4 }
 0x5e4   :  { %v1194_v25 = vadd.f32 %v1193_v32, %v1192_v24 }
 0x5e6   :  { %v1195_v16 = vrot.slane %v1194_v25, 2 }
 0x5e7   :  { %v1291_v35 = vpop.permute.xlu2 %1290 }
 0x5e8   :  { %v1196_v41 = vadd.f32 %v1195_v16, %v1194_v25  ;;  %v1296_v7 = vpop.permute.xlu0 %1295  ;;  %v1301_v12 = vpop.permute.xlu1 %1300 }
 0x5ea   :  { %v1197_v29 = vrot.slane %v1196_v41, 1 }
 0x5ec   :  { %v1198_v31 = vadd.f32 %v1197_v29, %v1196_v41 }
 0x5ee   :  { %v1199_v20 = vmul.f32 %v1198_v31, %v1160_v46 }
 0x5ef   :  { %v1306_v30 = vpop.permute.xlu2 %1305 }
 0x5f0   :  { %v1200_v22 = vadd.f32 1e-05, %v1199_v20  ;;  %v1311_v58 = vpop.permute.xlu0 %1310 }
 0x5f2   :  { %1652 = vrsqrt.f32 %v1200_v22  ;;  %vm1207_vm6 = vweird.f32 %v1200_v22 }
 0x5f8   :  { %v1653_v37 = vpop.eup %1652 }
 0x5f9   :  { %v1202_v39 = vmul.f32 %v1653_v37, %v1200_v22  ;;  %vm1208_vm5 = vweird.f32 %v1653_v37 }
 0x5fa   :  { %vm1209_vm7 = vmor %vm1207_vm6, %vm1208_vm5 }
 0x5fb   :  { %v1203_v40 = vmul.f32 %v1653_v37, %v1202_v39 }
 0x5fd   :  { %v1204_v11 = vmul.f32 0.5, %v1203_v40 }
 0x5ff   :  { %v1205_v36 = vsub.f32 1.5, %v1204_v11 }
 0x601   :  { %v1206_v18 = vmul.f32 %v1653_v37, %v1205_v36 }
 0x603   :  { %v1210_v42 = vsel %vm1209_vm7, %v1653_v37, %v1206_v18 }
 0x604   :  { %v1218_v45 = vmul.f32 %v1210_v42, %v1169_v1  ;;  %v1216_v56 = vmul.f32 %v1210_v42, %v1167_v28  ;;  %v1213_v46 = vmul.f32 %v1210_v42, %v2144_v49  ;;  %v1212_v47 = vmul.f32 %v1210_v42, %v2142_v19 }
 0x605   :  { %v1211_v43 = vmul.f32 %v1210_v42, %v2140_v55  ;;  %v1215_v3 = vmul.f32 %v1210_v42, %v2148_v44  ;;  %v1214_v51 = vmul.f32 %v1210_v42, %v2146_v10  ;;  %v1217_v52 = vmul.f32 %v1210_v42, %v1168_v60  ;;  %v1321_v10 = vpop.permute.xlu2 %1320  ;;  %v1316_v60 = vpop.permute.xlu1 %1315 }
 0x606   :  { %v1272_v53 = vmul.f32 %v1255_v33, %v1216_v56  ;;  %v1269_v54 = vmul.f32 %v1240_v59, %v1213_v46  ;;  %v1268_v57 = vmul.f32 %v1235_v14, %v1212_v47  ;;  %v1274_v49 = vmul.f32 %v1265_v34, %v1218_v45 }
 0x607   :  { %v1267_v61 = vmul.f32 %v1230_v4, %v1211_v43  ;;  %v1271_v62 = vmul.f32 %v1250_v23, %v1215_v3  ;;  %v1270_v63 = vmul.f32 %v1245_v26, %v1214_v51  ;;  %v1273_v19 = vmul.f32 %v1260_v0, %v1217_v52 }
 0x608   :  { %v1328_v1 = vadd.f32 %v1311_v58, %v1272_v53  ;;  %v1325_v28 = vadd.f32 %v1296_v7, %v1269_v54  ;;  %v1324_v48 = vadd.f32 %v1291_v35, %v1268_v57  ;;  %v1330_v50 = vadd.f32 %v1321_v10, %v1274_v49 }
 0x609   :  { %v1323_v2 = vadd.f32 %v1286_v38, %v1267_v61  ;;  %v1327_v55 = vadd.f32 %v1306_v30, %v1271_v62  ;;  %v1326_v44 = vadd.f32 %v1301_v12, %v1270_v63  ;;  %v1329_v4 = vadd.f32 %v1316_v60, %v1273_v19 }
 0x60a   :  { %1336 = vst.msk [vmem:[%s2252_s7 + $0x28] sm:$0xff] %vm328_vm1, %v1328_v1  ;;  %1351 = vrot.lane.b32.xlu2 %v1325_v28, %s1656_s2  ;;  %1349 = vrot.lane.b32.xlu1 %v1324_v48, %s1656_s2 }
 0x60b   :  { %1333 = vst.msk [vmem:[%s2252_s7 + $0x10] sm:$0xff] %vm328_vm1, %v1325_v28  ;;  %1347 = vrot.lane.b32.xlu0 %v1323_v2, %s1656_s2 }
 0x60c   :  { %1332 = vst.msk [vmem:[%s2252_s7 + $0x8] sm:$0xff] %vm328_vm1, %v1324_v48 }
 0x60d   :  { %1331 = vst.msk [vmem:[%s2252_s7] sm:$0xff] %vm328_vm1, %v1323_v2 }
 0x60e   :  { %1335 = vst.msk [vmem:[%s2252_s7 + $0x20] sm:$0xff] %vm328_vm1, %v1327_v55 }
 0x60f   :  { %1334 = vst.msk [vmem:[%s2252_s7 + $0x18] sm:$0xff] %vm328_vm1, %v1326_v44 }
 0x610   :  { %1338 = vst.msk [vmem:[%s2252_s7 + $0x38] sm:$0xff] %vm328_vm1, %v1330_v50 }
 0x611   :  { %1337 = vst.msk [vmem:[%s2252_s7 + $0x30] sm:$0xff] %vm328_vm1, %v1329_v4 }
 0x612   :  { %1357 = vrot.lane.b32.xlu2 %v1328_v1, %s1656_s2  ;;  %1355 = vrot.lane.b32.xlu1 %v1327_v55, %s1656_s2 }
 0x613   :  { %1353 = vrot.lane.b32.xlu0 %v1326_v44, %s1656_s2 }
 0x61a   :  { %1361 = vrot.lane.b32.xlu1 %v1330_v50, %s1656_s2 }
 0x61b   :  { %1359 = vrot.lane.b32.xlu0 %v1329_v4, %s1656_s2 }
 0x664   :  { %v1352_v5 = vpop.permute.xlu2 %1351 }
 0x665   :  { %1466 = vst.msk [vmem:[%s2252_s7 + $0x50] sm:$0xff] %vm328_vm1, %v1352_v5 }
 0x66c   :  { %v1358_v6 = vpop.permute.xlu2 %1357 }
 0x66d   :  { %1469 = vst.msk [vmem:[%s2252_s7 + $0x68] sm:$0xff] %vm328_vm1, %v1358_v6 }
 0x67c   :  { %v1350_v8 = vpop.permute.xlu1 %1349 }
 0x67d   :  { %1465 = vst.msk [vmem:[%s2252_s7 + $0x48] sm:$0xff] %vm328_vm1, %v1350_v8  ;;  %v1348_v9 = vpop.permute.xlu0 %1347 }
 0x67e   :  { %1464 = vst.msk [vmem:[%s2252_s7 + $0x40] sm:$0xff] %vm328_vm1, %v1348_v9 }
 0x684   :  { %v1356_v13 = vpop.permute.xlu1 %1355 }
 0x685   :  { %1468 = vst.msk [vmem:[%s2252_s7 + $0x60] sm:$0xff] %vm328_vm1, %v1356_v13  ;;  %v1354_v15 = vpop.permute.xlu0 %1353 }
 0x686   :  { %1467 = vst.msk [vmem:[%s2252_s7 + $0x58] sm:$0xff] %vm328_vm1, %v1354_v15 }
 0x68c   :  { %v1362_v27 = vpop.permute.xlu1 %1361 }
 0x68d   :  { %1471 = vst.msk [vmem:[%s2252_s7 + $0x78] sm:$0xff] %vm328_vm1, %v1362_v27  ;;  %v1360_v17 = vpop.permute.xlu0 %1359 }
 0x68e   :  { %1470 = vst.msk [vmem:[%s2252_s7 + $0x70] sm:$0xff] %vm328_vm1, %v1360_v17 }

</bundles_post_ra>
